<compile_context>
chip_gen: v7x
topology: tpu7x:2x2x1
jax: 0.10.0
libtpu: 0.0.40
codegen_flags: <defaults>
</compile_context>

<pallas_src>
import functools
import math

import jax
import jax.numpy as jnp
from jax import lax
from jax.experimental import pallas as pl
from jax.experimental.pallas import tpu as pltpu


# ----------------------------------------------------------------------------
# Pallas kernel: whole forward pass in one invocation (no grid).
# ----------------------------------------------------------------------------
def decoder_kernel(x_ref,       # (B, D)       raw input
                   wih1_ref,    # (D, 4D)      lstm1 W_ih^T, gates [i,f,o,g]
                   whh1_ref,    # (D, 4D)      lstm1 W_hh^T, gates [i,f,o,g]
                   b1_ref,      # (1, 4D)      lstm1 b_ih + b_hh, gates [i,f,o,g]
                   w2_ref,      # (D+H, 4H)    fused [W_ih2^T ; W_hh2^T], gates [i,f,o,g]
                   b2_ref,      # (1, 4H)      lstm2 b_ih + b_hh, gates [i,f,o,g]
                   wout_ref,    # (H, NVP)     output W^T, zero-padded to NVP lanes
                   bout_ref,    # (1, NVP)     output b,  zero-padded to NVP lanes
                   out_ref,     # (T*B, NVP)   output, row = t*B + b (time-major)
                   *, T, B, D, H):
    x = x_ref[...]                                                      # (B, D)

    # Hoisted layer-1 input-side gates: only B distinct input rows exist.
    gx = (jnp.dot(x, wih1_ref[...], preferred_element_type=jnp.float32)
          + b1_ref[...])                                                # (B, 4D)

    # PyTorch semantics: x.repeat(T, NV).reshape(B, T, D)[b, t] = x[(b*T + t) % B].
    # The row pattern has period B in t -> build the B distinct (B, 4D) selections
    # ONCE (no per-step broadcast/concat on the serial chain).
    gx_by_phase = []
    for phase in range(B):
        rows = [(b * T + phase) % B for b in range(B)]
        if all(r == rows[0] for r in rows):
            gx_by_phase.append(
                jnp.broadcast_to(gx[rows[0]:rows[0] + 1, :], (B, 4 * D)))
        else:
            gx_by_phase.append(
                jnp.concatenate([gx[r:r + 1, :] for r in rows], axis=0))

    # Carried LSTM state lives in vregs across the unrolled loop.
    h1 = jnp.zeros((B, D), jnp.float32)
    c1 = jnp.zeros((B, D), jnp.float32)
    h2 = jnp.zeros((B, H), jnp.float32)
    c2 = jnp.zeros((B, H), jnp.float32)

    h2_steps = []

    for t in range(T):  # fully unrolled, static indices everywhere
        gx_t = gx_by_phase[t % B]

        # ---------------- LSTM layer 1 (hidden = D), gates [i,f,o,g] ----------
        g1 = gx_t + jnp.dot(h1, whh1_ref[...],
                            preferred_element_type=jnp.float32)          # (B, 4D)
        sg1 = jax.nn.sigmoid(g1[:, :3 * D])                              # i|f|o
        a1 = jnp.tanh(g1[:, 3 * D:])                                     # g
        c1 = sg1[:, D:2 * D] * c1 + sg1[:, :D] * a1
        h1 = sg1[:, 2 * D:3 * D] * jnp.tanh(c1)

        # ---------------- LSTM layer 2 (hidden = H = 2D), fused matmul --------
        h12 = jnp.concatenate([h1, h2], axis=-1)                         # (B, D+H)
        g2 = (jnp.dot(h12, w2_ref[...], preferred_element_type=jnp.float32)
              + b2_ref[...])                                             # (B, 4H)
        sg2 = jax.nn.sigmoid(g2[:, :3 * H])                              # i|f|o
        a2 = jnp.tanh(g2[:, 3 * H:])                                     # g
        c2 = sg2[:, H:2 * H] * c2 + sg2[:, :H] * a2
        h2 = sg2[:, 2 * H:3 * H] * jnp.tanh(c2)

        h2_steps.append(h2)

    # Output projection off the serial chain: one matmul over all T*B rows,
    # lane-dense result, single whole-block store.
    h2_all = jnp.concatenate(h2_steps, axis=0)                           # (T*B, H)
    out = (jnp.dot(h2_all, wout_ref[...], preferred_element_type=jnp.float32)
           + bout_ref[...])                                              # (T*B, NVP)
    out_ref[...] = out.astype(out_ref.dtype)


# ----------------------------------------------------------------------------
# Wrapper
# ----------------------------------------------------------------------------
def _reorder_gates_ifog(w, n):
    """Permute gate blocks on the last axis: PyTorch [i,f,g,o] -> [i,f,o,g]."""
    return jnp.concatenate(
        [w[..., 0 * n:1 * n], w[..., 1 * n:2 * n],
         w[..., 3 * n:4 * n], w[..., 2 * n:3 * n]], axis=-1)


def decoder_forward(x, params, *, context_len, n_variables, input_dim):
    """Replicates Decoder.forward: x is (B, input_dim); returns (B, T, n_variables)."""
    B = x.shape[0]
    D = input_dim
    H = 2 * D
    NV = n_variables
    T = context_len
    NVP = pl.cdiv(NV, 128) * 128          # lane-dense padded output width

    # Pre-transpose weights, fold the two bias vectors per layer, reorder gates,
    # fuse the layer-2 input/recurrent weights, and pad the output head.
    wih1_t = _reorder_gates_ifog(params["wih1"].T, D)                       # (D, 4D)
    whh1_t = _reorder_gates_ifog(params["whh1"].T, D)                       # (D, 4D)
    b1 = _reorder_gates_ifog(
        (params["bih1"] + params["bhh1"]).reshape(1, 4 * D), D)             # (1, 4D)
    w2_fused = _reorder_gates_ifog(
        jnp.concatenate([params["wih2"].T, params["whh2"].T], axis=0), H)   # (D+H, 4H)
    b2 = _reorder_gates_ifog(
        (params["bih2"] + params["bhh2"]).reshape(1, 4 * H), H)             # (1, 4H)
    wout_p = jnp.zeros((H, NVP), jnp.float32).at[:, :NV].set(params["wout"].T)
    bout_p = jnp.zeros((1, NVP), jnp.float32).at[:, :NV].set(
        params["bout"].reshape(1, NV))

    kernel = functools.partial(decoder_kernel, T=T, B=B, D=D, H=H)

    out_flat = pl.pallas_call(
        kernel,
        out_shape=jax.ShapeDtypeStruct((T * B, NVP), jnp.float32),
        # No grid: single invocation; all operands are whole VMEM-resident blocks
        # (working set << 1 MiB, fine on v5e/v6e/v7x).
        compiler_params=pltpu.CompilerParams(vmem_limit_bytes=16 * 1024 * 1024),
    )(x, wih1_t, whh1_t, b1, w2_fused, b2, wout_p, bout_p)

    # Drop lane padding; row order is t*B + b -> (T, B, NV) -> batch-first.
    out = out_flat[:, :NV]
    return jnp.transpose(out.reshape(T, B, NV), (1, 0, 2))


# ----------------------------------------------------------------------------
# Pure-JAX reference (lax.scan, original PyTorch gate order) for correctness.
# ----------------------------------------------------------------------------
def _lstm_ref(x_seq, wih, whh, bih, bhh, hidden):
    B = x_seq.shape[0]

    def step(carry, x_t):
        h, c = carry
        g = x_t @ wih.T + h @ whh.T + bih + bhh
        i, f, gg, o = jnp.split(g, 4, axis=-1)
        c = jax.nn.sigmoid(f) * c + jax.nn.sigmoid(i) * jnp.tanh(gg)
        h = jax.nn.sigmoid(o) * jnp.tanh(c)
        return (h, c), h

    h0 = jnp.zeros((B, hidden), jnp.float32)
    c0 = jnp.zeros((B, hidden), jnp.float32)
    _, hs = lax.scan(step, (h0, c0), jnp.transpose(x_seq, (1, 0, 2)))
    return jnp.transpose(hs, (1, 0, 2))


def decoder_ref(x, params, *, context_len, n_variables, input_dim):
    B = x.shape[0]
    D, H, T, NV = input_dim, 2 * input_dim, context_len, n_variables
    # Exact PyTorch semantics: x.repeat(context_len, n_variables).reshape(B, T, D)
    x_rep = jnp.tile(x, (T, NV)).reshape(B, T, D)
    h1 = _lstm_ref(x_rep, params["wih1"], params["whh1"],
                   params["bih1"], params["bhh1"], D)
    h2 = _lstm_ref(h1, params["wih2"], params["whh2"],
                   params["bih2"], params["bhh2"], H)
    return h2 @ params["wout"].T + params["bout"]


# ----------------------------------------------------------------------------
# Main
# ----------------------------------------------------------------------------
if __name__ == "__main__":
    batch = 2
    input_dim = 32
    context_len = 8
    n_variables = 1      # NOTE: model's repeat/reshape only shape-valid for NV=1

    D = input_dim
    H = 2 * D
    NV = n_variables

    key = jax.random.PRNGKey(0)
    keys = jax.random.split(key, 11)

    def u(k, shape, scale):
        return jax.random.uniform(k, shape, jnp.float32, -scale, scale)

    s1 = 1.0 / math.sqrt(D)
    s2 = 1.0 / math.sqrt(H)

    params = {
        "wih1": u(keys[0], (4 * D, D), s1),
        "whh1": u(keys[1], (4 * D, D), s1),
        "bih1": u(keys[2], (4 * D,), s1),
        "bhh1": u(keys[3], (4 * D,), s1),
        "wih2": u(keys[4], (4 * H, D), s2),
        "whh2": u(keys[5], (4 * H, H), s2),
        "bih2": u(keys[6], (4 * H,), s2),
        "bhh2": u(keys[7], (4 * H,), s2),
        "wout": u(keys[8], (NV, H), s2),
        "bout": u(keys[9], (NV,), s2),
    }

    x = jax.random.normal(keys[10], (batch, input_dim), jnp.float32)

    out = decoder_forward(x, params, context_len=context_len,
                          n_variables=n_variables, input_dim=input_dim)
    out = jax.block_until_ready(out)

    ref = decoder_ref(x, params, context_len=context_len,
                      n_variables=n_variables, input_dim=input_dim)

    assert out.shape == (batch, context_len, n_variables), out.shape
    assert jnp.allclose(out, ref, atol=1e-4, rtol=1e-4), \
        float(jnp.max(jnp.abs(out - ref)))

    print("KERNEL_OK")
</pallas_src>

<mosaic_0001>
module attributes {stable_mosaic.version = 11 : i64} {
  func.func @decoder_kernel(%arg0: memref<2x32xf32, #tpu.memory_space<vmem>>, %arg1: memref<32x128xf32, #tpu.memory_space<vmem>>, %arg2: memref<32x128xf32, #tpu.memory_space<vmem>>, %arg3: memref<1x128xf32, #tpu.memory_space<vmem>>, %arg4: memref<96x256xf32, #tpu.memory_space<vmem>>, %arg5: memref<1x256xf32, #tpu.memory_space<vmem>>, %arg6: memref<64x128xf32, #tpu.memory_space<vmem>>, %arg7: memref<1x128xf32, #tpu.memory_space<vmem>>, %arg8: memref<16x128xf32, #tpu.memory_space<vmem>>) attributes {dimension_semantics = [], scalar_prefetch = 0 : i64, scratch_operands = 0 : i64, tpu.core_type = #tpu.core_type<tc>} {
    %c0 = arith.constant 0 : index
    %c0_0 = arith.constant 0 : index
    %0 = vector.load %arg0[%c0, %c0_0] : memref<2x32xf32, #tpu.memory_space<vmem>>, vector<2x32xf32>
    %c0_1 = arith.constant 0 : index
    %c0_2 = arith.constant 0 : index
    %1 = vector.load %arg1[%c0_1, %c0_2] : memref<32x128xf32, #tpu.memory_space<vmem>>, vector<32x128xf32>
    %cst = arith.constant dense<0.000000e+00> : vector<2x128xf32>
    %2 = tpu.matmul %0, %1, %cst {dimension_numbers = #tpu.dot_dimension_numbers<[1], [0], [0], [1], [0, 0, 1, 1], [], []>} : vector<2x32xf32>, vector<32x128xf32>, vector<2x128xf32> -> vector<2x128xf32>
    %c0_3 = arith.constant 0 : index
    %c0_4 = arith.constant 0 : index
    %3 = vector.load %arg3[%c0_3, %c0_4] : memref<1x128xf32, #tpu.memory_space<vmem>>, vector<1x128xf32>
    %4 = vector.broadcast %3 : vector<1x128xf32> to vector<2x128xf32>
    %5 = arith.addf %2, %4 : vector<2x128xf32>
    %6 = vector.extract_strided_slice %5 {offsets = [0, 0], sizes = [1, 128], strides = [1, 1]} : vector<2x128xf32> to vector<1x128xf32>
    %7 = vector.shape_cast %6 : vector<1x128xf32> to vector<1x128xf32>
    %8 = vector.broadcast %7 : vector<1x128xf32> to vector<2x128xf32>
    %9 = vector.extract_strided_slice %5 {offsets = [1, 0], sizes = [1, 128], strides = [1, 1]} : vector<2x128xf32> to vector<1x128xf32>
    %10 = vector.shape_cast %9 : vector<1x128xf32> to vector<1x128xf32>
    %11 = vector.broadcast %10 : vector<1x128xf32> to vector<2x128xf32>
    %cst_5 = arith.constant 0.000000e+00 : f32
    %12 = vector.broadcast %cst_5 : f32 to vector<2x32xf32>
    %cst_6 = arith.constant 0.000000e+00 : f32
    %13 = vector.broadcast %cst_6 : f32 to vector<2x32xf32>
    %cst_7 = arith.constant 0.000000e+00 : f32
    %14 = vector.broadcast %cst_7 : f32 to vector<2x64xf32>
    %cst_8 = arith.constant 0.000000e+00 : f32
    %15 = vector.broadcast %cst_8 : f32 to vector<2x64xf32>
    %c0_9 = arith.constant 0 : index
    %c0_10 = arith.constant 0 : index
    %16 = vector.load %arg2[%c0_9, %c0_10] : memref<32x128xf32, #tpu.memory_space<vmem>>, vector<32x128xf32>
    %cst_11 = arith.constant dense<0.000000e+00> : vector<2x128xf32>
    %17 = tpu.matmul %12, %16, %cst_11 {dimension_numbers = #tpu.dot_dimension_numbers<[1], [0], [0], [1], [0, 0, 1, 1], [], []>} : vector<2x32xf32>, vector<32x128xf32>, vector<2x128xf32> -> vector<2x128xf32>
    %18 = arith.addf %8, %17 : vector<2x128xf32>
    %19 = vector.extract_strided_slice %18 {offsets = [0, 0], sizes = [2, 96], strides = [1, 1]} : vector<2x128xf32> to vector<2x96xf32>
    %20 = arith.negf %19 : vector<2x96xf32>
    %21 = math.exp %20 : vector<2x96xf32>
    %cst_12 = arith.constant 1.000000e+00 : f32
    %22 = vector.broadcast %cst_12 : f32 to vector<2x96xf32>
    %23 = arith.addf %22, %21 : vector<2x96xf32>
    %24 = arith.divf %22, %23 : vector<2x96xf32>
    %25 = vector.extract_strided_slice %18 {offsets = [0, 96], sizes = [2, 32], strides = [1, 1]} : vector<2x128xf32> to vector<2x32xf32>
    %26 = math.tanh %25 : vector<2x32xf32>
    %27 = vector.extract_strided_slice %24 {offsets = [0, 32], sizes = [2, 32], strides = [1, 1]} : vector<2x96xf32> to vector<2x32xf32>
    %28 = arith.mulf %27, %13 : vector<2x32xf32>
    %29 = vector.extract_strided_slice %24 {offsets = [0, 0], sizes = [2, 32], strides = [1, 1]} : vector<2x96xf32> to vector<2x32xf32>
    %30 = arith.mulf %29, %26 : vector<2x32xf32>
    %31 = arith.addf %28, %30 : vector<2x32xf32>
    %32 = vector.extract_strided_slice %24 {offsets = [0, 64], sizes = [2, 32], strides = [1, 1]} : vector<2x96xf32> to vector<2x32xf32>
    %33 = math.tanh %31 : vector<2x32xf32>
    %34 = arith.mulf %32, %33 : vector<2x32xf32>
    %35 = tpu.concatenate %34, %14 in 1 : vector<2x32xf32>, vector<2x64xf32> -> vector<2x96xf32>
    %c0_13 = arith.constant 0 : index
    %c0_14 = arith.constant 0 : index
    %36 = vector.load %arg4[%c0_13, %c0_14] : memref<96x256xf32, #tpu.memory_space<vmem>>, vector<96x256xf32>
    %cst_15 = arith.constant dense<0.000000e+00> : vector<2x256xf32>
    %37 = tpu.matmul %35, %36, %cst_15 {dimension_numbers = #tpu.dot_dimension_numbers<[1], [0], [0], [1], [0, 0, 1, 1], [], []>} : vector<2x96xf32>, vector<96x256xf32>, vector<2x256xf32> -> vector<2x256xf32>
    %c0_16 = arith.constant 0 : index
    %c0_17 = arith.constant 0 : index
    %38 = vector.load %arg5[%c0_16, %c0_17] : memref<1x256xf32, #tpu.memory_space<vmem>>, vector<1x256xf32>
    %39 = vector.broadcast %38 : vector<1x256xf32> to vector<2x256xf32>
    %40 = arith.addf %37, %39 : vector<2x256xf32>
    %41 = vector.extract_strided_slice %40 {offsets = [0, 0], sizes = [2, 192], strides = [1, 1]} : vector<2x256xf32> to vector<2x192xf32>
    %42 = arith.negf %41 : vector<2x192xf32>
    %43 = math.exp %42 : vector<2x192xf32>
    %cst_18 = arith.constant 1.000000e+00 : f32
    %44 = vector.broadcast %cst_18 : f32 to vector<2x192xf32>
    %45 = arith.addf %44, %43 : vector<2x192xf32>
    %46 = arith.divf %44, %45 : vector<2x192xf32>
    %47 = vector.extract_strided_slice %40 {offsets = [0, 192], sizes = [2, 64], strides = [1, 1]} : vector<2x256xf32> to vector<2x64xf32>
    %48 = math.tanh %47 : vector<2x64xf32>
    %49 = vector.extract_strided_slice %46 {offsets = [0, 64], sizes = [2, 64], strides = [1, 1]} : vector<2x192xf32> to vector<2x64xf32>
    %50 = arith.mulf %49, %15 : vector<2x64xf32>
    %51 = vector.extract_strided_slice %46 {offsets = [0, 0], sizes = [2, 64], strides = [1, 1]} : vector<2x192xf32> to vector<2x64xf32>
    %52 = arith.mulf %51, %48 : vector<2x64xf32>
    %53 = arith.addf %50, %52 : vector<2x64xf32>
    %54 = vector.extract_strided_slice %46 {offsets = [0, 128], sizes = [2, 64], strides = [1, 1]} : vector<2x192xf32> to vector<2x64xf32>
    %55 = math.tanh %53 : vector<2x64xf32>
    %56 = arith.mulf %54, %55 : vector<2x64xf32>
    %c0_19 = arith.constant 0 : index
    %c0_20 = arith.constant 0 : index
    %57 = vector.load %arg2[%c0_19, %c0_20] : memref<32x128xf32, #tpu.memory_space<vmem>>, vector<32x128xf32>
    %cst_21 = arith.constant dense<0.000000e+00> : vector<2x128xf32>
    %58 = tpu.matmul %34, %57, %cst_21 {dimension_numbers = #tpu.dot_dimension_numbers<[1], [0], [0], [1], [0, 0, 1, 1], [], []>} : vector<2x32xf32>, vector<32x128xf32>, vector<2x128xf32> -> vector<2x128xf32>
    %59 = arith.addf %11, %58 : vector<2x128xf32>
    %60 = vector.extract_strided_slice %59 {offsets = [0, 0], sizes = [2, 96], strides = [1, 1]} : vector<2x128xf32> to vector<2x96xf32>
    %61 = arith.negf %60 : vector<2x96xf32>
    %62 = math.exp %61 : vector<2x96xf32>
    %cst_22 = arith.constant 1.000000e+00 : f32
    %63 = vector.broadcast %cst_22 : f32 to vector<2x96xf32>
    %64 = arith.addf %63, %62 : vector<2x96xf32>
    %65 = arith.divf %63, %64 : vector<2x96xf32>
    %66 = vector.extract_strided_slice %59 {offsets = [0, 96], sizes = [2, 32], strides = [1, 1]} : vector<2x128xf32> to vector<2x32xf32>
    %67 = math.tanh %66 : vector<2x32xf32>
    %68 = vector.extract_strided_slice %65 {offsets = [0, 32], sizes = [2, 32], strides = [1, 1]} : vector<2x96xf32> to vector<2x32xf32>
    %69 = arith.mulf %68, %31 : vector<2x32xf32>
    %70 = vector.extract_strided_slice %65 {offsets = [0, 0], sizes = [2, 32], strides = [1, 1]} : vector<2x96xf32> to vector<2x32xf32>
    %71 = arith.mulf %70, %67 : vector<2x32xf32>
    %72 = arith.addf %69, %71 : vector<2x32xf32>
    %73 = vector.extract_strided_slice %65 {offsets = [0, 64], sizes = [2, 32], strides = [1, 1]} : vector<2x96xf32> to vector<2x32xf32>
    %74 = math.tanh %72 : vector<2x32xf32>
    %75 = arith.mulf %73, %74 : vector<2x32xf32>
    %76 = tpu.concatenate %75, %56 in 1 : vector<2x32xf32>, vector<2x64xf32> -> vector<2x96xf32>
    %c0_23 = arith.constant 0 : index
    %c0_24 = arith.constant 0 : index
    %77 = vector.load %arg4[%c0_23, %c0_24] : memref<96x256xf32, #tpu.memory_space<vmem>>, vector<96x256xf32>
    %cst_25 = arith.constant dense<0.000000e+00> : vector<2x256xf32>
    %78 = tpu.matmul %76, %77, %cst_25 {dimension_numbers = #tpu.dot_dimension_numbers<[1], [0], [0], [1], [0, 0, 1, 1], [], []>} : vector<2x96xf32>, vector<96x256xf32>, vector<2x256xf32> -> vector<2x256xf32>
    %c0_26 = arith.constant 0 : index
    %c0_27 = arith.constant 0 : index
    %79 = vector.load %arg5[%c0_26, %c0_27] : memref<1x256xf32, #tpu.memory_space<vmem>>, vector<1x256xf32>
    %80 = vector.broadcast %79 : vector<1x256xf32> to vector<2x256xf32>
    %81 = arith.addf %78, %80 : vector<2x256xf32>
    %82 = vector.extract_strided_slice %81 {offsets = [0, 0], sizes = [2, 192], strides = [1, 1]} : vector<2x256xf32> to vector<2x192xf32>
    %83 = arith.negf %82 : vector<2x192xf32>
    %84 = math.exp %83 : vector<2x192xf32>
    %cst_28 = arith.constant 1.000000e+00 : f32
    %85 = vector.broadcast %cst_28 : f32 to vector<2x192xf32>
    %86 = arith.addf %85, %84 : vector<2x192xf32>
    %87 = arith.divf %85, %86 : vector<2x192xf32>
    %88 = vector.extract_strided_slice %81 {offsets = [0, 192], sizes = [2, 64], strides = [1, 1]} : vector<2x256xf32> to vector<2x64xf32>
    %89 = math.tanh %88 : vector<2x64xf32>
    %90 = vector.extract_strided_slice %87 {offsets = [0, 64], sizes = [2, 64], strides = [1, 1]} : vector<2x192xf32> to vector<2x64xf32>
    %91 = arith.mulf %90, %53 : vector<2x64xf32>
    %92 = vector.extract_strided_slice %87 {offsets = [0, 0], sizes = [2, 64], strides = [1, 1]} : vector<2x192xf32> to vector<2x64xf32>
    %93 = arith.mulf %92, %89 : vector<2x64xf32>
    %94 = arith.addf %91, %93 : vector<2x64xf32>
    %95 = vector.extract_strided_slice %87 {offsets = [0, 128], sizes = [2, 64], strides = [1, 1]} : vector<2x192xf32> to vector<2x64xf32>
    %96 = math.tanh %94 : vector<2x64xf32>
    %97 = arith.mulf %95, %96 : vector<2x64xf32>
    %c0_29 = arith.constant 0 : index
    %c0_30 = arith.constant 0 : index
    %98 = vector.load %arg2[%c0_29, %c0_30] : memref<32x128xf32, #tpu.memory_space<vmem>>, vector<32x128xf32>
    %cst_31 = arith.constant dense<0.000000e+00> : vector<2x128xf32>
    %99 = tpu.matmul %75, %98, %cst_31 {dimension_numbers = #tpu.dot_dimension_numbers<[1], [0], [0], [1], [0, 0, 1, 1], [], []>} : vector<2x32xf32>, vector<32x128xf32>, vector<2x128xf32> -> vector<2x128xf32>
    %100 = arith.addf %8, %99 : vector<2x128xf32>
    %101 = vector.extract_strided_slice %100 {offsets = [0, 0], sizes = [2, 96], strides = [1, 1]} : vector<2x128xf32> to vector<2x96xf32>
    %102 = arith.negf %101 : vector<2x96xf32>
    %103 = math.exp %102 : vector<2x96xf32>
    %cst_32 = arith.constant 1.000000e+00 : f32
    %104 = vector.broadcast %cst_32 : f32 to vector<2x96xf32>
    %105 = arith.addf %104, %103 : vector<2x96xf32>
    %106 = arith.divf %104, %105 : vector<2x96xf32>
    %107 = vector.extract_strided_slice %100 {offsets = [0, 96], sizes = [2, 32], strides = [1, 1]} : vector<2x128xf32> to vector<2x32xf32>
    %108 = math.tanh %107 : vector<2x32xf32>
    %109 = vector.extract_strided_slice %106 {offsets = [0, 32], sizes = [2, 32], strides = [1, 1]} : vector<2x96xf32> to vector<2x32xf32>
    %110 = arith.mulf %109, %72 : vector<2x32xf32>
    %111 = vector.extract_strided_slice %106 {offsets = [0, 0], sizes = [2, 32], strides = [1, 1]} : vector<2x96xf32> to vector<2x32xf32>
    %112 = arith.mulf %111, %108 : vector<2x32xf32>
    %113 = arith.addf %110, %112 : vector<2x32xf32>
    %114 = vector.extract_strided_slice %106 {offsets = [0, 64], sizes = [2, 32], strides = [1, 1]} : vector<2x96xf32> to vector<2x32xf32>
    %115 = math.tanh %113 : vector<2x32xf32>
    %116 = arith.mulf %114, %115 : vector<2x32xf32>
    %117 = tpu.concatenate %116, %97 in 1 : vector<2x32xf32>, vector<2x64xf32> -> vector<2x96xf32>
    %c0_33 = arith.constant 0 : index
    %c0_34 = arith.constant 0 : index
    %118 = vector.load %arg4[%c0_33, %c0_34] : memref<96x256xf32, #tpu.memory_space<vmem>>, vector<96x256xf32>
    %cst_35 = arith.constant dense<0.000000e+00> : vector<2x256xf32>
    %119 = tpu.matmul %117, %118, %cst_35 {dimension_numbers = #tpu.dot_dimension_numbers<[1], [0], [0], [1], [0, 0, 1, 1], [], []>} : vector<2x96xf32>, vector<96x256xf32>, vector<2x256xf32> -> vector<2x256xf32>
    %c0_36 = arith.constant 0 : index
    %c0_37 = arith.constant 0 : index
    %120 = vector.load %arg5[%c0_36, %c0_37] : memref<1x256xf32, #tpu.memory_space<vmem>>, vector<1x256xf32>
    %121 = vector.broadcast %120 : vector<1x256xf32> to vector<2x256xf32>
    %122 = arith.addf %119, %121 : vector<2x256xf32>
    %123 = vector.extract_strided_slice %122 {offsets = [0, 0], sizes = [2, 192], strides = [1, 1]} : vector<2x256xf32> to vector<2x192xf32>
    %124 = arith.negf %123 : vector<2x192xf32>
    %125 = math.exp %124 : vector<2x192xf32>
    %cst_38 = arith.constant 1.000000e+00 : f32
    %126 = vector.broadcast %cst_38 : f32 to vector<2x192xf32>
    %127 = arith.addf %126, %125 : vector<2x192xf32>
    %128 = arith.divf %126, %127 : vector<2x192xf32>
    %129 = vector.extract_strided_slice %122 {offsets = [0, 192], sizes = [2, 64], strides = [1, 1]} : vector<2x256xf32> to vector<2x64xf32>
    %130 = math.tanh %129 : vector<2x64xf32>
    %131 = vector.extract_strided_slice %128 {offsets = [0, 64], sizes = [2, 64], strides = [1, 1]} : vector<2x192xf32> to vector<2x64xf32>
    %132 = arith.mulf %131, %94 : vector<2x64xf32>
    %133 = vector.extract_strided_slice %128 {offsets = [0, 0], sizes = [2, 64], strides = [1, 1]} : vector<2x192xf32> to vector<2x64xf32>
    %134 = arith.mulf %133, %130 : vector<2x64xf32>
    %135 = arith.addf %132, %134 : vector<2x64xf32>
    %136 = vector.extract_strided_slice %128 {offsets = [0, 128], sizes = [2, 64], strides = [1, 1]} : vector<2x192xf32> to vector<2x64xf32>
    %137 = math.tanh %135 : vector<2x64xf32>
    %138 = arith.mulf %136, %137 : vector<2x64xf32>
    %c0_39 = arith.constant 0 : index
    %c0_40 = arith.constant 0 : index
    %139 = vector.load %arg2[%c0_39, %c0_40] : memref<32x128xf32, #tpu.memory_space<vmem>>, vector<32x128xf32>
    %cst_41 = arith.constant dense<0.000000e+00> : vector<2x128xf32>
    %140 = tpu.matmul %116, %139, %cst_41 {dimension_numbers = #tpu.dot_dimension_numbers<[1], [0], [0], [1], [0, 0, 1, 1], [], []>} : vector<2x32xf32>, vector<32x128xf32>, vector<2x128xf32> -> vector<2x128xf32>
    %141 = arith.addf %11, %140 : vector<2x128xf32>
    %142 = vector.extract_strided_slice %141 {offsets = [0, 0], sizes = [2, 96], strides = [1, 1]} : vector<2x128xf32> to vector<2x96xf32>
    %143 = arith.negf %142 : vector<2x96xf32>
    %144 = math.exp %143 : vector<2x96xf32>
    %cst_42 = arith.constant 1.000000e+00 : f32
    %145 = vector.broadcast %cst_42 : f32 to vector<2x96xf32>
    %146 = arith.addf %145, %144 : vector<2x96xf32>
    %147 = arith.divf %145, %146 : vector<2x96xf32>
    %148 = vector.extract_strided_slice %141 {offsets = [0, 96], sizes = [2, 32], strides = [1, 1]} : vector<2x128xf32> to vector<2x32xf32>
    %149 = math.tanh %148 : vector<2x32xf32>
    %150 = vector.extract_strided_slice %147 {offsets = [0, 32], sizes = [2, 32], strides = [1, 1]} : vector<2x96xf32> to vector<2x32xf32>
    %151 = arith.mulf %150, %113 : vector<2x32xf32>
    %152 = vector.extract_strided_slice %147 {offsets = [0, 0], sizes = [2, 32], strides = [1, 1]} : vector<2x96xf32> to vector<2x32xf32>
    %153 = arith.mulf %152, %149 : vector<2x32xf32>
    %154 = arith.addf %151, %153 : vector<2x32xf32>
    %155 = vector.extract_strided_slice %147 {offsets = [0, 64], sizes = [2, 32], strides = [1, 1]} : vector<2x96xf32> to vector<2x32xf32>
    %156 = math.tanh %154 : vector<2x32xf32>
    %157 = arith.mulf %155, %156 : vector<2x32xf32>
    %158 = tpu.concatenate %157, %138 in 1 : vector<2x32xf32>, vector<2x64xf32> -> vector<2x96xf32>
    %c0_43 = arith.constant 0 : index
    %c0_44 = arith.constant 0 : index
    %159 = vector.load %arg4[%c0_43, %c0_44] : memref<96x256xf32, #tpu.memory_space<vmem>>, vector<96x256xf32>
    %cst_45 = arith.constant dense<0.000000e+00> : vector<2x256xf32>
    %160 = tpu.matmul %158, %159, %cst_45 {dimension_numbers = #tpu.dot_dimension_numbers<[1], [0], [0], [1], [0, 0, 1, 1], [], []>} : vector<2x96xf32>, vector<96x256xf32>, vector<2x256xf32> -> vector<2x256xf32>
    %c0_46 = arith.constant 0 : index
    %c0_47 = arith.constant 0 : index
    %161 = vector.load %arg5[%c0_46, %c0_47] : memref<1x256xf32, #tpu.memory_space<vmem>>, vector<1x256xf32>
    %162 = vector.broadcast %161 : vector<1x256xf32> to vector<2x256xf32>
    %163 = arith.addf %160, %162 : vector<2x256xf32>
    %164 = vector.extract_strided_slice %163 {offsets = [0, 0], sizes = [2, 192], strides = [1, 1]} : vector<2x256xf32> to vector<2x192xf32>
    %165 = arith.negf %164 : vector<2x192xf32>
    %166 = math.exp %165 : vector<2x192xf32>
    %cst_48 = arith.constant 1.000000e+00 : f32
    %167 = vector.broadcast %cst_48 : f32 to vector<2x192xf32>
    %168 = arith.addf %167, %166 : vector<2x192xf32>
    %169 = arith.divf %167, %168 : vector<2x192xf32>
    %170 = vector.extract_strided_slice %163 {offsets = [0, 192], sizes = [2, 64], strides = [1, 1]} : vector<2x256xf32> to vector<2x64xf32>
    %171 = math.tanh %170 : vector<2x64xf32>
    %172 = vector.extract_strided_slice %169 {offsets = [0, 64], sizes = [2, 64], strides = [1, 1]} : vector<2x192xf32> to vector<2x64xf32>
    %173 = arith.mulf %172, %135 : vector<2x64xf32>
    %174 = vector.extract_strided_slice %169 {offsets = [0, 0], sizes = [2, 64], strides = [1, 1]} : vector<2x192xf32> to vector<2x64xf32>
    %175 = arith.mulf %174, %171 : vector<2x64xf32>
    %176 = arith.addf %173, %175 : vector<2x64xf32>
    %177 = vector.extract_strided_slice %169 {offsets = [0, 128], sizes = [2, 64], strides = [1, 1]} : vector<2x192xf32> to vector<2x64xf32>
    %178 = math.tanh %176 : vector<2x64xf32>
    %179 = arith.mulf %177, %178 : vector<2x64xf32>
    %c0_49 = arith.constant 0 : index
    %c0_50 = arith.constant 0 : index
    %180 = vector.load %arg2[%c0_49, %c0_50] : memref<32x128xf32, #tpu.memory_space<vmem>>, vector<32x128xf32>
    %cst_51 = arith.constant dense<0.000000e+00> : vector<2x128xf32>
    %181 = tpu.matmul %157, %180, %cst_51 {dimension_numbers = #tpu.dot_dimension_numbers<[1], [0], [0], [1], [0, 0, 1, 1], [], []>} : vector<2x32xf32>, vector<32x128xf32>, vector<2x128xf32> -> vector<2x128xf32>
    %182 = arith.addf %8, %181 : vector<2x128xf32>
    %183 = vector.extract_strided_slice %182 {offsets = [0, 0], sizes = [2, 96], strides = [1, 1]} : vector<2x128xf32> to vector<2x96xf32>
    %184 = arith.negf %183 : vector<2x96xf32>
    %185 = math.exp %184 : vector<2x96xf32>
    %cst_52 = arith.constant 1.000000e+00 : f32
    %186 = vector.broadcast %cst_52 : f32 to vector<2x96xf32>
    %187 = arith.addf %186, %185 : vector<2x96xf32>
    %188 = arith.divf %186, %187 : vector<2x96xf32>
    %189 = vector.extract_strided_slice %182 {offsets = [0, 96], sizes = [2, 32], strides = [1, 1]} : vector<2x128xf32> to vector<2x32xf32>
    %190 = math.tanh %189 : vector<2x32xf32>
    %191 = vector.extract_strided_slice %188 {offsets = [0, 32], sizes = [2, 32], strides = [1, 1]} : vector<2x96xf32> to vector<2x32xf32>
    %192 = arith.mulf %191, %154 : vector<2x32xf32>
    %193 = vector.extract_strided_slice %188 {offsets = [0, 0], sizes = [2, 32], strides = [1, 1]} : vector<2x96xf32> to vector<2x32xf32>
    %194 = arith.mulf %193, %190 : vector<2x32xf32>
    %195 = arith.addf %192, %194 : vector<2x32xf32>
    %196 = vector.extract_strided_slice %188 {offsets = [0, 64], sizes = [2, 32], strides = [1, 1]} : vector<2x96xf32> to vector<2x32xf32>
    %197 = math.tanh %195 : vector<2x32xf32>
    %198 = arith.mulf %196, %197 : vector<2x32xf32>
    %199 = tpu.concatenate %198, %179 in 1 : vector<2x32xf32>, vector<2x64xf32> -> vector<2x96xf32>
    %c0_53 = arith.constant 0 : index
    %c0_54 = arith.constant 0 : index
    %200 = vector.load %arg4[%c0_53, %c0_54] : memref<96x256xf32, #tpu.memory_space<vmem>>, vector<96x256xf32>
    %cst_55 = arith.constant dense<0.000000e+00> : vector<2x256xf32>
    %201 = tpu.matmul %199, %200, %cst_55 {dimension_numbers = #tpu.dot_dimension_numbers<[1], [0], [0], [1], [0, 0, 1, 1], [], []>} : vector<2x96xf32>, vector<96x256xf32>, vector<2x256xf32> -> vector<2x256xf32>
    %c0_56 = arith.constant 0 : index
    %c0_57 = arith.constant 0 : index
    %202 = vector.load %arg5[%c0_56, %c0_57] : memref<1x256xf32, #tpu.memory_space<vmem>>, vector<1x256xf32>
    %203 = vector.broadcast %202 : vector<1x256xf32> to vector<2x256xf32>
    %204 = arith.addf %201, %203 : vector<2x256xf32>
    %205 = vector.extract_strided_slice %204 {offsets = [0, 0], sizes = [2, 192], strides = [1, 1]} : vector<2x256xf32> to vector<2x192xf32>
    %206 = arith.negf %205 : vector<2x192xf32>
    %207 = math.exp %206 : vector<2x192xf32>
    %cst_58 = arith.constant 1.000000e+00 : f32
    %208 = vector.broadcast %cst_58 : f32 to vector<2x192xf32>
    %209 = arith.addf %208, %207 : vector<2x192xf32>
    %210 = arith.divf %208, %209 : vector<2x192xf32>
    %211 = vector.extract_strided_slice %204 {offsets = [0, 192], sizes = [2, 64], strides = [1, 1]} : vector<2x256xf32> to vector<2x64xf32>
    %212 = math.tanh %211 : vector<2x64xf32>
    %213 = vector.extract_strided_slice %210 {offsets = [0, 64], sizes = [2, 64], strides = [1, 1]} : vector<2x192xf32> to vector<2x64xf32>
    %214 = arith.mulf %213, %176 : vector<2x64xf32>
    %215 = vector.extract_strided_slice %210 {offsets = [0, 0], sizes = [2, 64], strides = [1, 1]} : vector<2x192xf32> to vector<2x64xf32>
    %216 = arith.mulf %215, %212 : vector<2x64xf32>
    %217 = arith.addf %214, %216 : vector<2x64xf32>
    %218 = vector.extract_strided_slice %210 {offsets = [0, 128], sizes = [2, 64], strides = [1, 1]} : vector<2x192xf32> to vector<2x64xf32>
    %219 = math.tanh %217 : vector<2x64xf32>
    %220 = arith.mulf %218, %219 : vector<2x64xf32>
    %c0_59 = arith.constant 0 : index
    %c0_60 = arith.constant 0 : index
    %221 = vector.load %arg2[%c0_59, %c0_60] : memref<32x128xf32, #tpu.memory_space<vmem>>, vector<32x128xf32>
    %cst_61 = arith.constant dense<0.000000e+00> : vector<2x128xf32>
    %222 = tpu.matmul %198, %221, %cst_61 {dimension_numbers = #tpu.dot_dimension_numbers<[1], [0], [0], [1], [0, 0, 1, 1], [], []>} : vector<2x32xf32>, vector<32x128xf32>, vector<2x128xf32> -> vector<2x128xf32>
    %223 = arith.addf %11, %222 : vector<2x128xf32>
    %224 = vector.extract_strided_slice %223 {offsets = [0, 0], sizes = [2, 96], strides = [1, 1]} : vector<2x128xf32> to vector<2x96xf32>
    %225 = arith.negf %224 : vector<2x96xf32>
    %226 = math.exp %225 : vector<2x96xf32>
    %cst_62 = arith.constant 1.000000e+00 : f32
    %227 = vector.broadcast %cst_62 : f32 to vector<2x96xf32>
    %228 = arith.addf %227, %226 : vector<2x96xf32>
    %229 = arith.divf %227, %228 : vector<2x96xf32>
    %230 = vector.extract_strided_slice %223 {offsets = [0, 96], sizes = [2, 32], strides = [1, 1]} : vector<2x128xf32> to vector<2x32xf32>
    %231 = math.tanh %230 : vector<2x32xf32>
    %232 = vector.extract_strided_slice %229 {offsets = [0, 32], sizes = [2, 32], strides = [1, 1]} : vector<2x96xf32> to vector<2x32xf32>
    %233 = arith.mulf %232, %195 : vector<2x32xf32>
    %234 = vector.extract_strided_slice %229 {offsets = [0, 0], sizes = [2, 32], strides = [1, 1]} : vector<2x96xf32> to vector<2x32xf32>
    %235 = arith.mulf %234, %231 : vector<2x32xf32>
    %236 = arith.addf %233, %235 : vector<2x32xf32>
    %237 = vector.extract_strided_slice %229 {offsets = [0, 64], sizes = [2, 32], strides = [1, 1]} : vector<2x96xf32> to vector<2x32xf32>
    %238 = math.tanh %236 : vector<2x32xf32>
    %239 = arith.mulf %237, %238 : vector<2x32xf32>
    %240 = tpu.concatenate %239, %220 in 1 : vector<2x32xf32>, vector<2x64xf32> -> vector<2x96xf32>
    %c0_63 = arith.constant 0 : index
    %c0_64 = arith.constant 0 : index
    %241 = vector.load %arg4[%c0_63, %c0_64] : memref<96x256xf32, #tpu.memory_space<vmem>>, vector<96x256xf32>
    %cst_65 = arith.constant dense<0.000000e+00> : vector<2x256xf32>
    %242 = tpu.matmul %240, %241, %cst_65 {dimension_numbers = #tpu.dot_dimension_numbers<[1], [0], [0], [1], [0, 0, 1, 1], [], []>} : vector<2x96xf32>, vector<96x256xf32>, vector<2x256xf32> -> vector<2x256xf32>
    %c0_66 = arith.constant 0 : index
    %c0_67 = arith.constant 0 : index
    %243 = vector.load %arg5[%c0_66, %c0_67] : memref<1x256xf32, #tpu.memory_space<vmem>>, vector<1x256xf32>
    %244 = vector.broadcast %243 : vector<1x256xf32> to vector<2x256xf32>
    %245 = arith.addf %242, %244 : vector<2x256xf32>
    %246 = vector.extract_strided_slice %245 {offsets = [0, 0], sizes = [2, 192], strides = [1, 1]} : vector<2x256xf32> to vector<2x192xf32>
    %247 = arith.negf %246 : vector<2x192xf32>
    %248 = math.exp %247 : vector<2x192xf32>
    %cst_68 = arith.constant 1.000000e+00 : f32
    %249 = vector.broadcast %cst_68 : f32 to vector<2x192xf32>
    %250 = arith.addf %249, %248 : vector<2x192xf32>
    %251 = arith.divf %249, %250 : vector<2x192xf32>
    %252 = vector.extract_strided_slice %245 {offsets = [0, 192], sizes = [2, 64], strides = [1, 1]} : vector<2x256xf32> to vector<2x64xf32>
    %253 = math.tanh %252 : vector<2x64xf32>
    %254 = vector.extract_strided_slice %251 {offsets = [0, 64], sizes = [2, 64], strides = [1, 1]} : vector<2x192xf32> to vector<2x64xf32>
    %255 = arith.mulf %254, %217 : vector<2x64xf32>
    %256 = vector.extract_strided_slice %251 {offsets = [0, 0], sizes = [2, 64], strides = [1, 1]} : vector<2x192xf32> to vector<2x64xf32>
    %257 = arith.mulf %256, %253 : vector<2x64xf32>
    %258 = arith.addf %255, %257 : vector<2x64xf32>
    %259 = vector.extract_strided_slice %251 {offsets = [0, 128], sizes = [2, 64], strides = [1, 1]} : vector<2x192xf32> to vector<2x64xf32>
    %260 = math.tanh %258 : vector<2x64xf32>
    %261 = arith.mulf %259, %260 : vector<2x64xf32>
    %c0_69 = arith.constant 0 : index
    %c0_70 = arith.constant 0 : index
    %262 = vector.load %arg2[%c0_69, %c0_70] : memref<32x128xf32, #tpu.memory_space<vmem>>, vector<32x128xf32>
    %cst_71 = arith.constant dense<0.000000e+00> : vector<2x128xf32>
    %263 = tpu.matmul %239, %262, %cst_71 {dimension_numbers = #tpu.dot_dimension_numbers<[1], [0], [0], [1], [0, 0, 1, 1], [], []>} : vector<2x32xf32>, vector<32x128xf32>, vector<2x128xf32> -> vector<2x128xf32>
    %264 = arith.addf %8, %263 : vector<2x128xf32>
    %265 = vector.extract_strided_slice %264 {offsets = [0, 0], sizes = [2, 96], strides = [1, 1]} : vector<2x128xf32> to vector<2x96xf32>
    %266 = arith.negf %265 : vector<2x96xf32>
    %267 = math.exp %266 : vector<2x96xf32>
    %cst_72 = arith.constant 1.000000e+00 : f32
    %268 = vector.broadcast %cst_72 : f32 to vector<2x96xf32>
    %269 = arith.addf %268, %267 : vector<2x96xf32>
    %270 = arith.divf %268, %269 : vector<2x96xf32>
    %271 = vector.extract_strided_slice %264 {offsets = [0, 96], sizes = [2, 32], strides = [1, 1]} : vector<2x128xf32> to vector<2x32xf32>
    %272 = math.tanh %271 : vector<2x32xf32>
    %273 = vector.extract_strided_slice %270 {offsets = [0, 32], sizes = [2, 32], strides = [1, 1]} : vector<2x96xf32> to vector<2x32xf32>
    %274 = arith.mulf %273, %236 : vector<2x32xf32>
    %275 = vector.extract_strided_slice %270 {offsets = [0, 0], sizes = [2, 32], strides = [1, 1]} : vector<2x96xf32> to vector<2x32xf32>
    %276 = arith.mulf %275, %272 : vector<2x32xf32>
    %277 = arith.addf %274, %276 : vector<2x32xf32>
    %278 = vector.extract_strided_slice %270 {offsets = [0, 64], sizes = [2, 32], strides = [1, 1]} : vector<2x96xf32> to vector<2x32xf32>
    %279 = math.tanh %277 : vector<2x32xf32>
    %280 = arith.mulf %278, %279 : vector<2x32xf32>
    %281 = tpu.concatenate %280, %261 in 1 : vector<2x32xf32>, vector<2x64xf32> -> vector<2x96xf32>
    %c0_73 = arith.constant 0 : index
    %c0_74 = arith.constant 0 : index
    %282 = vector.load %arg4[%c0_73, %c0_74] : memref<96x256xf32, #tpu.memory_space<vmem>>, vector<96x256xf32>
    %cst_75 = arith.constant dense<0.000000e+00> : vector<2x256xf32>
    %283 = tpu.matmul %281, %282, %cst_75 {dimension_numbers = #tpu.dot_dimension_numbers<[1], [0], [0], [1], [0, 0, 1, 1], [], []>} : vector<2x96xf32>, vector<96x256xf32>, vector<2x256xf32> -> vector<2x256xf32>
    %c0_76 = arith.constant 0 : index
    %c0_77 = arith.constant 0 : index
    %284 = vector.load %arg5[%c0_76, %c0_77] : memref<1x256xf32, #tpu.memory_space<vmem>>, vector<1x256xf32>
    %285 = vector.broadcast %284 : vector<1x256xf32> to vector<2x256xf32>
    %286 = arith.addf %283, %285 : vector<2x256xf32>
    %287 = vector.extract_strided_slice %286 {offsets = [0, 0], sizes = [2, 192], strides = [1, 1]} : vector<2x256xf32> to vector<2x192xf32>
    %288 = arith.negf %287 : vector<2x192xf32>
    %289 = math.exp %288 : vector<2x192xf32>
    %cst_78 = arith.constant 1.000000e+00 : f32
    %290 = vector.broadcast %cst_78 : f32 to vector<2x192xf32>
    %291 = arith.addf %290, %289 : vector<2x192xf32>
    %292 = arith.divf %290, %291 : vector<2x192xf32>
    %293 = vector.extract_strided_slice %286 {offsets = [0, 192], sizes = [2, 64], strides = [1, 1]} : vector<2x256xf32> to vector<2x64xf32>
    %294 = math.tanh %293 : vector<2x64xf32>
    %295 = vector.extract_strided_slice %292 {offsets = [0, 64], sizes = [2, 64], strides = [1, 1]} : vector<2x192xf32> to vector<2x64xf32>
    %296 = arith.mulf %295, %258 : vector<2x64xf32>
    %297 = vector.extract_strided_slice %292 {offsets = [0, 0], sizes = [2, 64], strides = [1, 1]} : vector<2x192xf32> to vector<2x64xf32>
    %298 = arith.mulf %297, %294 : vector<2x64xf32>
    %299 = arith.addf %296, %298 : vector<2x64xf32>
    %300 = vector.extract_strided_slice %292 {offsets = [0, 128], sizes = [2, 64], strides = [1, 1]} : vector<2x192xf32> to vector<2x64xf32>
    %301 = math.tanh %299 : vector<2x64xf32>
    %302 = arith.mulf %300, %301 : vector<2x64xf32>
    %c0_79 = arith.constant 0 : index
    %c0_80 = arith.constant 0 : index
    %303 = vector.load %arg2[%c0_79, %c0_80] : memref<32x128xf32, #tpu.memory_space<vmem>>, vector<32x128xf32>
    %cst_81 = arith.constant dense<0.000000e+00> : vector<2x128xf32>
    %304 = tpu.matmul %280, %303, %cst_81 {dimension_numbers = #tpu.dot_dimension_numbers<[1], [0], [0], [1], [0, 0, 1, 1], [], []>} : vector<2x32xf32>, vector<32x128xf32>, vector<2x128xf32> -> vector<2x128xf32>
    %305 = arith.addf %11, %304 : vector<2x128xf32>
    %306 = vector.extract_strided_slice %305 {offsets = [0, 0], sizes = [2, 96], strides = [1, 1]} : vector<2x128xf32> to vector<2x96xf32>
    %307 = arith.negf %306 : vector<2x96xf32>
    %308 = math.exp %307 : vector<2x96xf32>
    %cst_82 = arith.constant 1.000000e+00 : f32
    %309 = vector.broadcast %cst_82 : f32 to vector<2x96xf32>
    %310 = arith.addf %309, %308 : vector<2x96xf32>
    %311 = arith.divf %309, %310 : vector<2x96xf32>
    %312 = vector.extract_strided_slice %305 {offsets = [0, 96], sizes = [2, 32], strides = [1, 1]} : vector<2x128xf32> to vector<2x32xf32>
    %313 = math.tanh %312 : vector<2x32xf32>
    %314 = vector.extract_strided_slice %311 {offsets = [0, 32], sizes = [2, 32], strides = [1, 1]} : vector<2x96xf32> to vector<2x32xf32>
    %315 = arith.mulf %314, %277 : vector<2x32xf32>
    %316 = vector.extract_strided_slice %311 {offsets = [0, 0], sizes = [2, 32], strides = [1, 1]} : vector<2x96xf32> to vector<2x32xf32>
    %317 = arith.mulf %316, %313 : vector<2x32xf32>
    %318 = arith.addf %315, %317 : vector<2x32xf32>
    %319 = vector.extract_strided_slice %311 {offsets = [0, 64], sizes = [2, 32], strides = [1, 1]} : vector<2x96xf32> to vector<2x32xf32>
    %320 = math.tanh %318 : vector<2x32xf32>
    %321 = arith.mulf %319, %320 : vector<2x32xf32>
    %322 = tpu.concatenate %321, %302 in 1 : vector<2x32xf32>, vector<2x64xf32> -> vector<2x96xf32>
    %c0_83 = arith.constant 0 : index
    %c0_84 = arith.constant 0 : index
    %323 = vector.load %arg4[%c0_83, %c0_84] : memref<96x256xf32, #tpu.memory_space<vmem>>, vector<96x256xf32>
    %cst_85 = arith.constant dense<0.000000e+00> : vector<2x256xf32>
    %324 = tpu.matmul %322, %323, %cst_85 {dimension_numbers = #tpu.dot_dimension_numbers<[1], [0], [0], [1], [0, 0, 1, 1], [], []>} : vector<2x96xf32>, vector<96x256xf32>, vector<2x256xf32> -> vector<2x256xf32>
    %c0_86 = arith.constant 0 : index
    %c0_87 = arith.constant 0 : index
    %325 = vector.load %arg5[%c0_86, %c0_87] : memref<1x256xf32, #tpu.memory_space<vmem>>, vector<1x256xf32>
    %326 = vector.broadcast %325 : vector<1x256xf32> to vector<2x256xf32>
    %327 = arith.addf %324, %326 : vector<2x256xf32>
    %328 = vector.extract_strided_slice %327 {offsets = [0, 0], sizes = [2, 192], strides = [1, 1]} : vector<2x256xf32> to vector<2x192xf32>
    %329 = arith.negf %328 : vector<2x192xf32>
    %330 = math.exp %329 : vector<2x192xf32>
    %cst_88 = arith.constant 1.000000e+00 : f32
    %331 = vector.broadcast %cst_88 : f32 to vector<2x192xf32>
    %332 = arith.addf %331, %330 : vector<2x192xf32>
    %333 = arith.divf %331, %332 : vector<2x192xf32>
    %334 = vector.extract_strided_slice %327 {offsets = [0, 192], sizes = [2, 64], strides = [1, 1]} : vector<2x256xf32> to vector<2x64xf32>
    %335 = math.tanh %334 : vector<2x64xf32>
    %336 = vector.extract_strided_slice %333 {offsets = [0, 64], sizes = [2, 64], strides = [1, 1]} : vector<2x192xf32> to vector<2x64xf32>
    %337 = arith.mulf %336, %299 : vector<2x64xf32>
    %338 = vector.extract_strided_slice %333 {offsets = [0, 0], sizes = [2, 64], strides = [1, 1]} : vector<2x192xf32> to vector<2x64xf32>
    %339 = arith.mulf %338, %335 : vector<2x64xf32>
    %340 = arith.addf %337, %339 : vector<2x64xf32>
    %341 = vector.extract_strided_slice %333 {offsets = [0, 128], sizes = [2, 64], strides = [1, 1]} : vector<2x192xf32> to vector<2x64xf32>
    %342 = math.tanh %340 : vector<2x64xf32>
    %343 = arith.mulf %341, %342 : vector<2x64xf32>
    %344 = tpu.concatenate %56, %97, %138, %179, %220, %261, %302, %343 in 0 : vector<2x64xf32>, vector<2x64xf32>, vector<2x64xf32>, vector<2x64xf32>, vector<2x64xf32>, vector<2x64xf32>, vector<2x64xf32>, vector<2x64xf32> -> vector<16x64xf32>
    %c0_89 = arith.constant 0 : index
    %c0_90 = arith.constant 0 : index
    %345 = vector.load %arg6[%c0_89, %c0_90] : memref<64x128xf32, #tpu.memory_space<vmem>>, vector<64x128xf32>
    %cst_91 = arith.constant dense<0.000000e+00> : vector<16x128xf32>
    %346 = tpu.matmul %344, %345, %cst_91 {dimension_numbers = #tpu.dot_dimension_numbers<[1], [0], [0], [1], [0, 0, 1, 1], [], []>} : vector<16x64xf32>, vector<64x128xf32>, vector<16x128xf32> -> vector<16x128xf32>
    %c0_92 = arith.constant 0 : index
    %c0_93 = arith.constant 0 : index
    %347 = vector.load %arg7[%c0_92, %c0_93] : memref<1x128xf32, #tpu.memory_space<vmem>>, vector<1x128xf32>
    %348 = vector.broadcast %347 : vector<1x128xf32> to vector<16x128xf32>
    %349 = arith.addf %346, %348 : vector<16x128xf32>
    %c0_94 = arith.constant 0 : index
    %c0_95 = arith.constant 0 : index
    %350 = vector.load %arg8[%c0_94, %c0_95] : memref<16x128xf32, #tpu.memory_space<vmem>>, vector<16x128xf32>
    tpu.vector_store %arg8[%c0_94, %c0_95], %349 {strides = array<i32>} : memref<16x128xf32, #tpu.memory_space<vmem>>, vector<16x128xf32>,
    return
  }
}

</mosaic_0001>

<bundles_post_ra>
// kernel: tpu_custom_call.1
= control target key start
LH: loop header
LB: loop body
LE: loop exit
PB: predicated region body
PF: predicated region fallthrough
CT: control target
= control target key end

     0   :  { %13 = vsyncpa [#allocation3], 0  ;;  %s3400_s0 = inlined_call_operand.hbm [shape: f32[2,32], index: 0, kind: input, shape index: {}]   ;;  %s3401_s1 = inlined_call_operand.hbm [shape: f32[32,128], index: 1, kind: input, shape index: {}]   ;;  %s3402_s2 = inlined_call_operand.hbm [shape: f32[32,128], index: 2, kind: input, shape index: {}]   ;;  %s3403_s3 = inlined_call_operand.vmem [shape: f32[1,128], index: 3, kind: input, shape index: {}]   ;;  %s3404_s4 = inlined_call_operand.hbm [shape: f32[96,256], index: 4, kind: input, shape index: {}]   ;;  %s3405_s5 = inlined_call_operand.vmem [shape: f32[1,256], index: 5, kind: input, shape index: {}]   ;;  %s3406_s6 = inlined_call_operand.hbm [shape: f32[64,128], index: 6, kind: input, shape index: {}]   ;;  %s3407_s7 = inlined_call_operand.vmem [shape: f32[1,128], index: 7, kind: input, shape index: {}]   ;;  %s3408_s8 = inlined_call_operand.hbm [shape: f32[16,128], index: 8, kind: output, shape index: {}]  }
   0x1   :  { %14 = vsyncpa [#allocation6], 0 }
   0x2   :  { %15 = vsyncpa [#allocation9], 0 }
   0x3   :  { %16 = vsyncpa [#allocation4], 0  ;;  %s2842_s27 = smov [#allocation5]   ;;  %s2702_s9 = scalar_lea.hbm %s3401_s1, 512 }
   0x4   :  { %s32_s28 = sshll.u32 %s2842_s27, 4  ;;  %p2703_p0 = scmp.ne.s32.totalorder %s3401_s1, %s2702_s9  ;;  %s33_s28 = int_to_ptr.vmem [resolvable:$true] %s32_s28 }
   0x5   :  { %p2706_p1 = scmp.lt.u32.totalorder %s2702_s9, %s3401_s1 }
   0x7   :  { %p2708_p2 = pnand %p2706_p1, %p2703_p0 }
   0x9   :  { %2711 = shalt.err (!%p2708_p2)
}
   0xa   :  { %s2712_s14 = scalar_lea.vmem %s33_s28, 512  ;;  %p2717_p4 = scmp.lt.s32.totalorder %s33_s28, %s33_s28 }
   0xb   :  { %p2713_p3 = scmp.ne.s32.totalorder %s33_s28, %s2712_s14  ;;  %p2718_p5 = scmp.lt.s32.totalorder %s2712_s14, %s2712_s14 }
   0xd   :  { %p2719_p6 = por %p2718_p5, %p2717_p4 }
   0xf   :  { %p2720_p7 = pnand %p2719_p6, %p2713_p3 }
  0x11   :  { %2723 = shalt.err (!%p2720_p7)
}
  0x12   :  { %s2843_s15 = smov 128   ;;  %s2844_s16 = smov 8  }
  0x13   :  { %38 = dma.hbm_to_vmem [thread:$0]  %s3401_s1, 512, %s33_s28, [#allocation6], %s2843_s15, %s2843_s15, %s2844_s16  }
  0x14   :  { %s2845_s19 = smov [#allocation8]   ;;  %s2724_s23 = scalar_lea.hbm %s3404_s4, 3072 }
  0x15   :  { %s58_s20 = sshll.u32 %s2845_s19, 4  ;;  %p2725_p8 = scmp.ne.s32.totalorder %s3404_s4, %s2724_s23  ;;  %s59_s20 = int_to_ptr.vmem [resolvable:$true] %s58_s20 }
  0x16   :  { %p2728_p9 = scmp.lt.u32.totalorder %s2724_s23, %s3404_s4 }
  0x18   :  { %p2730_p10 = pnand %p2728_p9, %p2725_p8 }
  0x1a   :  { %2733 = shalt.err (!%p2730_p10)
}
  0x1b   :  { %s2734_s29 = scalar_lea.vmem %s59_s20, 3072  ;;  %p2739_p12 = scmp.lt.s32.totalorder %s59_s20, %s59_s20 }
  0x1c   :  { %p2735_p11 = scmp.ne.s32.totalorder %s59_s20, %s2734_s29  ;;  %p2740_p13 = scmp.lt.s32.totalorder %s2734_s29, %s2734_s29 }
  0x1e   :  { %p2741_p0 = por %p2740_p13, %p2739_p12 }
  0x20   :  { %p2742_p1 = pnand %p2741_p0, %p2735_p11 }
  0x22   :  { %2745 = shalt.err (!%p2742_p1)
}
  0x23   :  { %s2846_s1 = smov 256   ;;  %s2847_s28 = smov 16  }
  0x24   :  { %64 = dma.hbm_to_vmem [thread:$0]  %s3404_s4, 3072, %s59_s20, [#allocation9], %s2846_s1, %s2846_s1, %s2847_s28  }
  0x25   :  { %s2848_s10 = smov [#allocation2]   ;;  %s2849_s12 = smov [#allocation7]  }
  0x26   :  { %s23_s11 = sshll.u32 %s2848_s10, 4  ;;  %s44_s13 = sshll.u32 %s2849_s12, 4  ;;  %s24_s11 = int_to_ptr.vmem [resolvable:$true] %s23_s11  ;;  %s2929_s13 = int_to_ptr.vmem [resolvable:$true] %s44_s13 }
  0x27   :  { %s2746_s18 = scalar_lea.hbm %s3400_s0, 32 }
  0x28   :  { %p2747_p2 = scmp.ne.s32.totalorder %s3400_s0, %s2746_s18  ;;  %p2750_p3 = scmp.lt.u32.totalorder %s2746_s18, %s3400_s0 }
  0x2a   :  { %p2752_p4 = pnand %p2750_p3, %p2747_p2 }
  0x2c   :  { %2755 = shalt.err (!%p2752_p4)
}
  0x2d   :  { %s2756_s4 = scalar_lea.vmem %s24_s11, 32  ;;  %p2761_p6 = scmp.lt.s32.totalorder %s24_s11, %s24_s11 }
  0x2e   :  { %p2757_p5 = scmp.ne.s32.totalorder %s24_s11, %s2756_s4  ;;  %p2762_p7 = scmp.lt.s32.totalorder %s2756_s4, %s2756_s4 }
  0x30   :  { %p2763_p8 = por %p2762_p7, %p2761_p6 }
  0x32   :  { %p2764_p9 = pnand %p2763_p8, %p2757_p5 }
  0x34   :  { %2767 = shalt.err (!%p2764_p9)
}
  0x35   :  { %26 = dma.hbm_to_vmem [thread:$0]  %s3400_s0, 32, %s24_s11, [#allocation3]  }
  0x36   :  { %s2768_s27 = scalar_lea.hbm %s3402_s2, 512 }
  0x37   :  { %p2769_p10 = scmp.ne.s32.totalorder %s3402_s2, %s2768_s27  ;;  %p2772_p11 = scmp.lt.u32.totalorder %s2768_s27, %s3402_s2 }
  0x39   :  { %p2774_p12 = pnand %p2772_p11, %p2769_p10 }
  0x3b   :  { %2777 = shalt.err (!%p2774_p12)
}
  0x3c   :  { %s2778_s9 = scalar_lea.vmem %s2929_s13, 512  ;;  %p2783_p0 = scmp.lt.s32.totalorder %s2929_s13, %s2929_s13 }
  0x3d   :  { %p2779_p13 = scmp.ne.s32.totalorder %s2929_s13, %s2778_s9  ;;  %p2784_p1 = scmp.lt.s32.totalorder %s2778_s9, %s2778_s9 }
  0x3f   :  { %p2785_p2 = por %p2784_p1, %p2783_p0 }
  0x41   :  { %p2786_p3 = pnand %p2785_p2, %p2779_p13 }
  0x43   :  { %2789 = shalt.err (!%p2786_p3)
}
  0x44   :  { %50 = dma.hbm_to_vmem [thread:$0]  %s3402_s2, 512, %s2929_s13, [#allocation6], %s2843_s15, %s2843_s15, %s2844_s16  }
  0x45   :  { %s2850_s11 = smov [#allocation10]   ;;  %s2790_s18 = scalar_lea.hbm %s3406_s6, 1024 }
  0x46   :  { %s72_s12 = sshll.u32 %s2850_s11, 4  ;;  %p2791_p4 = scmp.ne.s32.totalorder %s3406_s6, %s2790_s18  ;;  %s73_s12 = int_to_ptr.vmem [resolvable:$true] %s72_s12 }
  0x47   :  { %p2794_p5 = scmp.lt.u32.totalorder %s2790_s18, %s3406_s6 }
  0x49   :  { %p2796_p6 = pnand %p2794_p5, %p2791_p4 }
  0x4b   :  { %2799 = shalt.err (!%p2796_p6)
}
  0x4c   :  { %s2800_s4 = scalar_lea.vmem %s73_s12, 1024  ;;  %p2805_p8 = scmp.lt.s32.totalorder %s73_s12, %s73_s12 }
  0x4d   :  { %p2801_p7 = scmp.ne.s32.totalorder %s73_s12, %s2800_s4  ;;  %p2806_p9 = scmp.lt.s32.totalorder %s2800_s4, %s2800_s4 }
  0x4f   :  { %p2807_p10 = por %p2806_p9, %p2805_p8 }
  0x51   :  { %p2808_p11 = pnand %p2807_p10, %p2801_p7 }
  0x53   :  { %2811 = shalt.err (!%p2808_p11)
}
  0x54   :  { %78 = dma.hbm_to_vmem [thread:$0]  %s3406_s6, 1024, %s73_s12, [#allocation9], %s2843_s15, %s2843_s15, %s2844_s16  }
  0x55   :  { %2834 = dma.done.wait [#allocation3], 32  }
  0x56   :  { %2835 = vsyncadd [#allocation3], 4294967264 }
  0x57   :  { %2836 = dma.done.wait [#allocation6], 1024  }
  0x58   :  { %2837 = vsyncadd [#allocation6], 4294966272 }
  0x59   :  { %2838 = dma.done.wait [#allocation9], 4096  }
  0x5a   :  { %2839 = vsyncadd [#allocation9], 4294963200  ;;  %v2851_v0 = vmov 0.0|0.0   ;;  %vm2852_vm0 = vmmov 0   ;;  %v2853_v1 = vmov 0.0   ;;  %v97_v2 = vld [vmem:[#allocation5] sm:$0xff]  ;;  %v182_v15 = vlaneseq }
  0x5b   :  { %2265 = vmatprep.subr.bf16.mxu0 %v2851_v0  ;;  %2271 = vmatprep.subr.bf16.mxu1 %v2851_v0  ;;  %v98_v3 = vld [vmem:[#allocation5 + $0x8] sm:$0xff]  ;;  %v190_v4 = vld [vmem:[#allocation7] sm:$0xff]  ;;  %v99_v7 = vld [vmem:[#allocation5 + $0x10] sm:$0xff]  ;;  %vm108_vm1 = vcmask 261120   ;;  %s2855_s24 = smov 64   ;;  %vm333_vm2 = vcmask 785408  }
  0x5c   :  { %2155 = vmatprep.mubr.msk.f32.mxu0 %vm2852_vm0, %v2853_v1  ;;  %2166 = vmatprep.mubr.msk.f32.mxu1 %vm2852_vm0, %v2853_v1  ;;  %v2266_v5 = vpack.c.bf16 %v98_v3, %v97_v2  ;;  %v191_v6 = vld [vmem:[#allocation7 + $0x8] sm:$0xff]  ;;  %v100_v8 = vld [vmem:[#allocation5 + $0x18] sm:$0xff]  ;;  %v192_v10 = vld [vmem:[#allocation7 + $0x10] sm:$0xff]  ;;  %v3001_v16 = vshrl.u32 %v182_v15, 7  ;;  %vm1921_vm3 = vcmask 1041408   ;;  %vm1923_vm4 = vcmask 1043456  }
  0x5d   :  { %v2984_v9 = vpack.c.bf16 %v191_v6, %v190_v4  ;;  %v193_v11 = vld [vmem:[#allocation7 + $0x18] sm:$0xff]  ;;  %v2269_v12 = vpack.c.bf16 %v100_v8, %v99_v7  ;;  %v298_v38 = vld [vmem:[#allocation8 + $0x8] sm:$0xff]  ;;  %v297_v40 = vld [vmem:[#allocation8] sm:$0xff]  ;;  %vm1925_vm5 = vcmask 1045504   ;;  %vm1945_vm6 = vcmask 523264   ;;  %s2856_s29 = smov [#allocation11]  }
  0x5e   :  { %2267 = vmatpush3.bf16.msra.mxu0 %v2266_v5  ;;  %v2988_v13 = vpack.c.bf16 %v193_v11, %v192_v10  ;;  %v96_v14 = vld [vmem:[#allocation2] sm:$0x3]  ;;  %v184_v18 = vsub.s32 0, %v3001_v16  ;;  %v188_v19 = vsub.s32 1, %v3001_v16  ;;  %v299_v42 = vld [vmem:[#allocation8 + $0x10] sm:$0xff]  ;;  %v302_v43 = vld [vmem:[#allocation8 + $0x28] sm:$0xff] }
  0x5f   :  { %2268 = vmatprep.subr.bf16.mxu0 %v2851_v0  ;;  %2273 = vmatpush3.bf16.msra.mxu1 %v2984_v9  ;;  %v2048_v17 = vld [vmem:[%s3403_s3] ss:$0 sm:$0xff]  ;;  %s2854_s3 = smov 32   ;;  %v3024_v45 = vpack.c.bf16 %v299_v42, %v297_v40  ;;  %v301_v47 = vld [vmem:[#allocation8 + $0x20] sm:$0xff]  ;;  %v303_v48 = vld [vmem:[#allocation8 + $0x30] sm:$0xff]  ;;  %s2034_s1 = sshll.u32 %s2856_s29, 4  ;;  %s2035_s1 = int_to_ptr.vmem [resolvable:$true] %s2034_s1 }
  0x60   :  { %2274 = vmatprep.subr.bf16.mxu1 %v2851_v0  ;;  %v300_v39 = vld [vmem:[#allocation8 + $0x18] sm:$0xff]  ;;  %v306_v49 = vld [vmem:[#allocation8 + $0x48] sm:$0xff]  ;;  %v3031_v51 = vpack.c.bf16 %v303_v48, %v301_v47  ;;  %v305_v53 = vld [vmem:[#allocation8 + $0x40] sm:$0xff]  ;;  %s2812_s28 = scalar_lea.vmem %s2035_s1, 256  ;;  %p2817_p13 = scmp.lt.s32.totalorder %s2035_s1, %s2035_s1 }
  0x61   :  { %v3022_v41 = vpack.c.bf16 %v300_v39, %v298_v38  ;;  %v304_v44 = vld [vmem:[#allocation8 + $0x38] sm:$0xff]  ;;  %v307_v54 = vld [vmem:[#allocation8 + $0x50] sm:$0xff]  ;;  %v310_v55 = vld [vmem:[#allocation8 + $0x68] sm:$0xff]  ;;  %p2813_p12 = scmp.ne.s32.totalorder %s2035_s1, %s2812_s28  ;;  %p2818_p0 = scmp.lt.s32.totalorder %s2812_s28, %s2812_s28 }
  0x62   :  { %2270 = vmatpush3.bf16.msra.mxu0 %v2269_v12  ;;  %v3026_v46 = vpack.c.bf16 %v304_v44, %v302_v43  ;;  %v308_v50 = vld [vmem:[#allocation8 + $0x58] sm:$0xff]  ;;  %v3037_v57 = vpack.c.bf16 %v307_v54, %v305_v53  ;;  %v309_v59 = vld [vmem:[#allocation8 + $0x60] sm:$0xff]  ;;  %v311_v60 = vld [vmem:[#allocation8 + $0x70] sm:$0xff] }
  0x63   :  { %2276 = vmatpush3.bf16.msra.mxu1 %v2988_v13  ;;  %2278 = vmatprep.subr.bf16.mxu0 %v3022_v41  ;;  %v3034_v52 = vpack.c.bf16 %v308_v50, %v306_v49  ;;  %v312_v56 = vld [vmem:[#allocation8 + $0x78] sm:$0xff]  ;;  %v314_v62 = vld [vmem:[#allocation8 + $0x88] sm:$0xff]  ;;  %v3044_v2 = vpack.c.bf16 %v311_v60, %v309_v59  ;;  %v313_v4 = vld [vmem:[#allocation8 + $0x80] sm:$0xff]  ;;  %p2819_p1 = por %p2818_p0, %p2817_p13 }
  0x64   :  { %2301 = vmatprep.subr.bf16.mxu1 %v2851_v0  ;;  %v3040_v58 = vpack.c.bf16 %v312_v56, %v310_v55  ;;  %v316_v63 = vld [vmem:[#allocation8 + $0x98] sm:$0xff]  ;;  %v315_v5 = vld [vmem:[#allocation8 + $0x90] sm:$0xff]  ;;  %v318_v6 = vld [vmem:[#allocation8 + $0xa8] sm:$0xff] }
  0x65   :  { %2156 = vmatmul.mubr.msk.f32.vlgmr.msra.gmra.mrb[0].mxu0 %vm108_vm1, %v96_v14  ;;  %v3047_v3 = vpack.c.bf16 %v316_v63, %v314_v62  ;;  %v320_v7 = vld [vmem:[#allocation8 + $0xb8] sm:$0xff]  ;;  %v3050_v8 = vpack.c.bf16 %v315_v5, %v313_v4  ;;  %v317_v11 = vld [vmem:[#allocation8 + $0xa0] sm:$0xff]  ;;  %v319_v12 = vld [vmem:[#allocation8 + $0xb0] sm:$0xff]  ;;  %p2820_p2 = pnand %p2819_p1, %p2813_p12 }
  0x66   :  { %2167 = vmatmul.mubr.f32.vlgmr.msra.gmra.mrb[0].mxu1 %v2853_v1  ;;  %401 = vmatprep.mubr.f32.mxu0 %v2853_v1  ;;  %v3053_v10 = vpack.c.bf16 %v320_v7, %v318_v6  ;;  %v3056_v14 = vpack.c.bf16 %v319_v12, %v317_v11 }
  0x67   :  { %2303 = vmatpush3.bf16.msra.mxu1 %v2984_v9  ;;  %2177 = vmatprep.mubr.msk.f32.mxu1 %vm2852_vm0, %v2853_v1 }
  0x68   :  { %2304 = vmatprep.subr.bf16.mxu1 %v2851_v0  ;;  %2280 = vmatpush1.bf16.msra.mxu0 %v3024_v45 }
  0x69   :  { %2282 = vmatprep.subr.bf16.mxu0 %v3026_v46 }
  0x6b   :  { %2306 = vmatpush3.bf16.msra.mxu1 %v2988_v13 }
  0x6c   :  { %2308 = vmatprep.subr.bf16.mxu1 %v3022_v41  ;;  %2284 = vmatpush1.bf16.msra.mxu0 %v3031_v51 }
  0x6d   :  { %2286 = vmatprep.subr.bf16.mxu0 %v3034_v52 }
  0x70   :  { %2288 = vmatpush1.bf16.msra.mxu0 %v3037_v57 }
  0x71   :  { %2290 = vmatprep.subr.bf16.mxu0 %v3040_v58 }
  0x74   :  { %2292 = vmatpush1.bf16.msra.mxu0 %v3044_v2 }
  0x75   :  { %2294 = vmatprep.subr.bf16.mxu0 %v3047_v3 }
  0x78   :  { %2296 = vmatpush1.bf16.msra.mxu0 %v3050_v8 }
  0x79   :  { %2298 = vmatprep.subr.bf16.mxu0 %v3053_v10 }
  0x7c   :  { %2300 = vmatpush1.bf16.msra.mxu0 %v3056_v14 }
  0x7d   :  { %2331 = vmatprep.subr.bf16.mxu0 %v2851_v0 }
 0x138   :  { %v178_v20 = vpop.f32.mrb[0].mxu0 }
 0x139   :  { %v179_v21 = vadd.f32 %v2048_v17, %v178_v20  ;;  %v2157_v22 = vpop.f32.mrb[1].mxu0  ;;  %v263_v23 = vpop.f32.mrb[0].mxu1 }
 0x13a   :  { %v2168_v24 = vpop.f32.mrb[1].mxu1  ;;  %v321_v22 = vld [vmem:[%s3405_s5] sm:$0x3] }
 0x13b   :  { %v3010_v25 = vrot.slane %v179_v21, %v184_v18  ;;  %v3014_v26 = vrot.slane %v179_v21, %v188_v19 }
 0x13d   :  { %v267_v27 = vadd.f32 %v263_v23, %v3010_v25  ;;  %v3089_v23 = vrot.slane %v321_v22, %v188_v19  ;;  %v3097_v19 = vrot.slane %v321_v22, %v184_v18 }
 0x13f   :  { %2542 = vtanh.f32 %v267_v27  ;;  %v2050_v29 = vmul.f32 -1.442695, %v267_v27 }
 0x141   :  { %2544 = vpow2.f32 %v2050_v29 }
 0x149   :  { %v2543_v28 = vpop.eup %2542 }
 0x14a   :  { %277 = vrot.lane.b32.xlu0 %v2543_v28, %s2854_s3 }
 0x14b   :  { %v2545_v30 = vpop.eup %2544 }
 0x14c   :  { %v271_v31 = vadd.f32 1.0, %v2545_v30 }
 0x14e   :  { %2546 = vrcp.f32 %v271_v31 }
 0x158   :  { %v2547_v32 = vpop.eup %2546 }
 0x159   :  { %v275_v35 = vmul.f32 0.0, %v2547_v32 }
 0x1bc   :  { %v278_v33 = vpop.permute.xlu0 %277 }
 0x1bd   :  { %v280_v34 = vmul.f32 %v2547_v32, %v278_v33 }
 0x1bf   :  { %282 = vrot.lane.b32.xlu0 %v280_v34, %s2854_s3 }
 0x231   :  { %v283_v36 = vpop.permute.xlu0 %282 }
 0x232   :  { %v3019_v37 = vadd.f32 %v283_v36, %v275_v35 }
 0x234   :  { %2548 = vtanh.f32 %v3019_v37 }
 0x23e   :  { %v2549_v61 = vpop.eup %2548 }
 0x23f   :  { %288 = vrot.lane.b32.xlu1 %v2549_v61, %s2854_s3 }
 0x2b1   :  { %v289_v15 = vpop.permute.xlu1 %288 }
 0x2b2   :  { %v291_v17 = vmul.f32 %v2547_v32, %v289_v15 }
 0x2b4   :  { %293 = vrot.lane.b32.xlu1 %v291_v17, %s2855_s24 }
 0x326   :  { %v294_v20 = vpop.permute.xlu1 %293 }
 0x327   :  { %v296_v21 = vsel %vm108_vm1, %v294_v20, 0.0  ;;  %2178 = vmatmul.mubr.msk.f32.vlgmr.msra.gmra.mrb[2].mxu1 %vm108_vm1, %v294_v20 }
 0x328   :  { %2051 = vmatmul.mubr.msk.f32.vlgmr.msra.gmra.mrb[2].mxu0 %vm333_vm2, %v296_v21  ;;  %2310 = vmatpush1.bf16.msra.mxu1 %v3024_v45 }
 0x329   :  { %2312 = vmatprep.subr.bf16.mxu1 %v3026_v46  ;;  %2333 = vmatpush3.bf16.msra.mxu0 %v2984_v9 }
 0x32a   :  { %2334 = vmatprep.subr.bf16.mxu0 %v2851_v0  ;;  %2188 = vmatprep.mubr.msk.f32.mxu0 %vm2852_vm0, %v2853_v1 }
 0x32b   :  { %611 = vmatprep.mubr.f32.mxu1 %v2853_v1 }
 0x32c   :  { %2314 = vmatpush1.bf16.msra.mxu1 %v3031_v51 }
 0x32d   :  { %2316 = vmatprep.subr.bf16.mxu1 %v3034_v52  ;;  %2336 = vmatpush3.bf16.msra.mxu0 %v2988_v13 }
 0x32e   :  { %2338 = vmatprep.subr.bf16.mxu0 %v3022_v41 }
 0x330   :  { %2318 = vmatpush1.bf16.msra.mxu1 %v3037_v57 }
 0x331   :  { %2320 = vmatprep.subr.bf16.mxu1 %v3040_v58 }
 0x334   :  { %2322 = vmatpush1.bf16.msra.mxu1 %v3044_v2 }
 0x335   :  { %2324 = vmatprep.subr.bf16.mxu1 %v3047_v3 }
 0x338   :  { %2326 = vmatpush1.bf16.msra.mxu1 %v3050_v8 }
 0x339   :  { %2328 = vmatprep.subr.bf16.mxu1 %v3053_v10 }
 0x33c   :  { %2330 = vmatpush1.bf16.msra.mxu1 %v3056_v14 }
 0x33d   :  { %2361 = vmatprep.subr.bf16.mxu1 %v2851_v0 }
 0x3fa   :  { %v506_v24 = vpop.f32.mrb[2].mxu1 }
 0x3fb   :  { %v510_v27 = vadd.f32 %v506_v24, %v3014_v26  ;;  %v403_v28 = vpop.f32.mrb[2].mxu0  ;;  %v2179_v29 = vpop.f32.mrb[3].mxu1 }
 0x3fc   :  { %v405_v30 = vpop.f32.mrb[3].mxu0  ;;  %v404_v35 = vadd.f32 %v403_v28, %v3097_v19 }
 0x3fd   :  { %2550 = vtanh.f32 %v510_v27  ;;  %v406_v31 = vadd.f32 %v405_v30, %v3089_v23  ;;  %v2055_v34 = vmul.f32 -1.442695, %v510_v27 }
 0x3fe   :  { %v2052_v36 = vmul.f32 -1.442695, %v404_v35 }
 0x3ff   :  { %2552 = vtanh.f32 %v406_v31  ;;  %v2053_v61 = vmul.f32 -1.442695, %v406_v31 }
 0x400   :  { %2554 = vpow2.f32 %v2055_v34 }
 0x401   :  { %2556 = vpow2.f32 %v2052_v36 }
 0x407   :  { %v2551_v32 = vpop.eup %2550 }
 0x408   :  { %520 = vrot.lane.b32.xlu1 %v2551_v32, %s2854_s3 }
 0x409   :  { %v2553_v33 = vpop.eup %2552 }
 0x40a   :  { %423 = vrot.lane.b32.xlu0 %v2553_v33, %s2855_s24  ;;  %v2555_v38 = vpop.eup %2554 }
 0x40b   :  { %v514_v39 = vadd.f32 1.0, %v2555_v38  ;;  %v2557_v40 = vpop.eup %2556 }
 0x40c   :  { %v414_v42 = vadd.f32 1.0, %v2557_v40 }
 0x40d   :  { %2558 = vrcp.f32 %v514_v39 }
 0x40e   :  { %2560 = vrcp.f32 %v414_v42 }
 0x417   :  { %v2559_v43 = vpop.eup %2558 }
 0x418   :  { %v2561_v16 = vpop.eup %2560  ;;  %v518_v49 = vmul.f32 %v2559_v43, %v3019_v37 }
 0x419   :  { %v421_v54 = vmul.f32 0.0, %v2561_v16 }
 0x47a   :  { %v521_v44 = vpop.permute.xlu1 %520 }
 0x47b   :  { %v523_v47 = vmul.f32 %v2559_v43, %v521_v44 }
 0x47c   :  { %v424_v18 = vpop.permute.xlu0 %423 }
 0x47d   :  { %525 = vrot.lane.b32.xlu1 %v523_v47, %s2854_s3  ;;  %v426_v48 = vmul.f32 %v2561_v16, %v424_v18 }
 0x47f   :  { %428 = vrot.lane.b32.xlu0 %v426_v48, %s2855_s24 }
 0x4ef   :  { %v526_v50 = vpop.permute.xlu1 %525 }
 0x4f0   :  { %v3103_v53 = vadd.f32 %v526_v50, %v518_v49 }
 0x4f1   :  { %v429_v55 = vpop.permute.xlu0 %428 }
 0x4f2   :  { %2562 = vtanh.f32 %v3103_v53  ;;  %v3106_v56 = vadd.f32 %v429_v55, %v421_v54 }
 0x4f4   :  { %2564 = vtanh.f32 %v3106_v56 }
 0x4f5   :  { %2566 = vpow2.f32 %v2053_v61 }
 0x4fc   :  { %v2563_v59 = vpop.eup %2562 }
 0x4fd   :  { %531 = vrot.lane.b32.xlu1 %v2563_v59, %s2854_s3 }
 0x4fe   :  { %v2565_v60 = vpop.eup %2564 }
 0x4ff   :  { %434 = vrot.lane.b32.xlu0 %v2565_v60, %s2855_s24  ;;  %v2567_v37 = vpop.eup %2566 }
 0x500   :  { %v415_v62 = vadd.f32 1.0, %v2567_v37 }
 0x502   :  { %2568 = vrcp.f32 %v415_v62 }
 0x50c   :  { %v2569_v5 = vpop.eup %2568 }
 0x56f   :  { %v532_v63 = vpop.permute.xlu1 %531 }
 0x570   :  { %v534_v4 = vmul.f32 %v2559_v43, %v532_v63 }
 0x571   :  { %v435_v6 = vpop.permute.xlu0 %434 }
 0x572   :  { %536 = vrot.lane.b32.xlu0 %v534_v4, %s2855_s24  ;;  %v3112_v7 = vmul.f32 %v2569_v5, %v435_v6 }
 0x574   :  { %540 = vrot.lane.b32.xlu1 %v3112_v7, %s2854_s3 }
 0x5e4   :  { %v537_v11 = vpop.permute.xlu0 %536 }
 0x5e5   :  { %2189 = vmatmul.mubr.msk.f32.vlgmr.msra.gmra.mrb[4].mxu0 %vm108_vm1, %v537_v11 }
 0x5e6   :  { %2340 = vmatpush1.bf16.msra.mxu0 %v3024_v45  ;;  %821 = vmatprep.mubr.f32.mxu0 %v2853_v1  ;;  %v541_v12 = vpop.permute.xlu1 %540 }
 0x5e7   :  { %2342 = vmatprep.subr.bf16.mxu0 %v3026_v46  ;;  %v543_v15 = vsel %vm108_vm1, %v537_v11, %v541_v12 }
 0x5e8   :  { %2056 = vmatmul.mubr.msk.f32.vlgmr.msra.gmra.mrb[4].mxu1 %vm333_vm2, %v543_v15 }
 0x5e9   :  { %2363 = vmatpush3.bf16.msra.mxu1 %v2984_v9  ;;  %2199 = vmatprep.mubr.msk.f32.mxu1 %vm2852_vm0, %v2853_v1 }
 0x5ea   :  { %2344 = vmatpush1.bf16.msra.mxu0 %v3031_v51  ;;  %2364 = vmatprep.subr.bf16.mxu1 %v2851_v0 }
 0x5eb   :  { %2346 = vmatprep.subr.bf16.mxu0 %v3034_v52 }
 0x5ed   :  { %2366 = vmatpush3.bf16.msra.mxu1 %v2988_v13 }
 0x5ee   :  { %2348 = vmatpush1.bf16.msra.mxu0 %v3037_v57  ;;  %2368 = vmatprep.subr.bf16.mxu1 %v3022_v41 }
 0x5ef   :  { %2350 = vmatprep.subr.bf16.mxu0 %v3040_v58 }
 0x5f2   :  { %2352 = vmatpush1.bf16.msra.mxu0 %v3044_v2 }
 0x5f3   :  { %2354 = vmatprep.subr.bf16.mxu0 %v3047_v3 }
 0x5f6   :  { %2356 = vmatpush1.bf16.msra.mxu0 %v3050_v8 }
 0x5f7   :  { %2358 = vmatprep.subr.bf16.mxu0 %v3053_v10 }
 0x5fa   :  { %2360 = vmatpush1.bf16.msra.mxu0 %v3056_v14 }
 0x5fb   :  { %2391 = vmatprep.subr.bf16.mxu0 %v2851_v0 }
 0x6b8   :  { %v716_v17 = vpop.f32.mrb[4].mxu0 }
 0x6b9   :  { %v720_v20 = vadd.f32 %v716_v17, %v3010_v25  ;;  %v2190_v21 = vpop.f32.mrb[5].mxu0 }
 0x6bb   :  { %2570 = vtanh.f32 %v720_v20  ;;  %v613_v22 = vpop.f32.mrb[4].mxu1  ;;  %v2060_v30 = vmul.f32 -1.442695, %v720_v20 }
 0x6bc   :  { %v615_v24 = vpop.f32.mrb[5].mxu1  ;;  %v614_v31 = vadd.f32 %v613_v22, %v3097_v19 }
 0x6bd   :  { %v616_v27 = vadd.f32 %v615_v24, %v3089_v23 }
 0x6be   :  { %v2057_v32 = vmul.f32 -1.442695, %v614_v31 }
 0x6bf   :  { %2572 = vtanh.f32 %v616_v27  ;;  %v2058_v59 = vmul.f32 -1.442695, %v616_v27 }
 0x6c0   :  { %2574 = vpow2.f32 %v2060_v30 }
 0x6c1   :  { %2576 = vpow2.f32 %v2057_v32 }
 0x6c5   :  { %v2571_v28 = vpop.eup %2570 }
 0x6c6   :  { %730 = vrot.lane.b32.xlu1 %v2571_v28, %s2854_s3 }
 0x6c9   :  { %v2573_v29 = vpop.eup %2572 }
 0x6ca   :  { %633 = vrot.lane.b32.xlu0 %v2573_v29, %s2855_s24  ;;  %v2575_v33 = vpop.eup %2574 }
 0x6cb   :  { %v724_v34 = vadd.f32 1.0, %v2575_v33  ;;  %v2577_v35 = vpop.eup %2576 }
 0x6cc   :  { %v624_v36 = vadd.f32 1.0, %v2577_v35 }
 0x6cd   :  { %2578 = vrcp.f32 %v724_v34 }
 0x6ce   :  { %2580 = vrcp.f32 %v624_v36 }
 0x6d7   :  { %v2579_v38 = vpop.eup %2578 }
 0x6d8   :  { %v2581_v42 = vpop.eup %2580  ;;  %v728_v47 = vmul.f32 %v2579_v38, %v3103_v53 }
 0x6d9   :  { %v631_v48 = vmul.f32 %v2581_v42, %v3106_v56 }
 0x738   :  { %v731_v39 = vpop.permute.xlu1 %730 }
 0x739   :  { %v733_v40 = vmul.f32 %v2579_v38, %v731_v39 }
 0x73b   :  { %735 = vrot.lane.b32.xlu1 %v733_v40, %s2854_s3 }
 0x73c   :  { %v634_v43 = vpop.permute.xlu0 %633 }
 0x73d   :  { %v636_v44 = vmul.f32 %v2581_v42, %v634_v43 }
 0x73f   :  { %638 = vrot.lane.b32.xlu0 %v636_v44, %s2855_s24 }
 0x7ad   :  { %v736_v16 = vpop.permute.xlu1 %735 }
 0x7ae   :  { %v3146_v18 = vadd.f32 %v736_v16, %v728_v47 }
 0x7b0   :  { %2582 = vtanh.f32 %v3146_v18 }
 0x7b1   :  { %v639_v49 = vpop.permute.xlu0 %638 }
 0x7b2   :  { %v3150_v50 = vadd.f32 %v639_v49, %v631_v48 }
 0x7b4   :  { %2584 = vtanh.f32 %v3150_v50 }
 0x7b5   :  { %2586 = vpow2.f32 %v2058_v59 }
 0x7ba   :  { %v2583_v54 = vpop.eup %2582 }
 0x7bb   :  { %741 = vrot.lane.b32.xlu1 %v2583_v54, %s2854_s3 }
 0x7be   :  { %v2585_v55 = vpop.eup %2584 }
 0x7bf   :  { %644 = vrot.lane.b32.xlu0 %v2585_v55, %s2855_s24  ;;  %v2587_v53 = vpop.eup %2586 }
 0x7c0   :  { %v625_v60 = vadd.f32 1.0, %v2587_v53 }
 0x7c2   :  { %2588 = vrcp.f32 %v625_v60 }
 0x7cc   :  { %v2589_v56 = vpop.eup %2588 }
 0x82d   :  { %v742_v61 = vpop.permute.xlu1 %741 }
 0x82e   :  { %v744_v37 = vmul.f32 %v2579_v38, %v742_v61 }
 0x830   :  { %746 = vrot.lane.b32.xlu0 %v744_v37, %s2855_s24 }
 0x831   :  { %v645_v62 = vpop.permute.xlu0 %644 }
 0x832   :  { %v3156_v63 = vmul.f32 %v2589_v56, %v645_v62 }
 0x834   :  { %750 = vrot.lane.b32.xlu1 %v3156_v63, %s2854_s3  ;;  %v1908_v61 = vrot.slane %v3156_v63, 6 }
 0x8a2   :  { %v747_v4 = vpop.permute.xlu0 %746 }
 0x8a3   :  { %2200 = vmatmul.mubr.msk.f32.vlgmr.msra.gmra.mrb[6].mxu1 %vm108_vm1, %v747_v4 }
 0x8a4   :  { %2370 = vmatpush1.bf16.msra.mxu1 %v3024_v45  ;;  %1031 = vmatprep.mubr.f32.mxu1 %v2853_v1 }
 0x8a5   :  { %2372 = vmatprep.subr.bf16.mxu1 %v3026_v46 }
 0x8a6   :  { %v751_v5 = vpop.permute.xlu1 %750 }
 0x8a7   :  { %v753_v6 = vsel %vm108_vm1, %v747_v4, %v751_v5  ;;  %v1922_v4 = vsel %vm1921_vm3, %v3112_v7, %v1908_v61 }
 0x8a8   :  { %2374 = vmatpush1.bf16.msra.mxu1 %v3031_v51  ;;  %2061 = vmatmul.mubr.msk.f32.vlgmr.msra.gmra.mrb[6].mxu0 %vm333_vm2, %v753_v6 }
 0x8a9   :  { %2376 = vmatprep.subr.bf16.mxu1 %v3034_v52  ;;  %2393 = vmatpush3.bf16.msra.mxu0 %v2984_v9 }
 0x8aa   :  { %2394 = vmatprep.subr.bf16.mxu0 %v2851_v0  ;;  %2210 = vmatprep.mubr.msk.f32.mxu0 %vm2852_vm0, %v2853_v1 }
 0x8ac   :  { %2378 = vmatpush1.bf16.msra.mxu1 %v3037_v57 }
 0x8ad   :  { %2380 = vmatprep.subr.bf16.mxu1 %v3040_v58  ;;  %2396 = vmatpush3.bf16.msra.mxu0 %v2988_v13 }
 0x8ae   :  { %2398 = vmatprep.subr.bf16.mxu0 %v3022_v41 }
 0x8b0   :  { %2382 = vmatpush1.bf16.msra.mxu1 %v3044_v2 }
 0x8b1   :  { %2384 = vmatprep.subr.bf16.mxu1 %v3047_v3 }
 0x8b4   :  { %2386 = vmatpush1.bf16.msra.mxu1 %v3050_v8 }
 0x8b5   :  { %2388 = vmatprep.subr.bf16.mxu1 %v3053_v10 }
 0x8b8   :  { %2390 = vmatpush1.bf16.msra.mxu1 %v3056_v14 }
 0x8b9   :  { %2421 = vmatprep.subr.bf16.mxu1 %v2851_v0 }
 0x976   :  { %v926_v11 = vpop.f32.mrb[6].mxu1 }
 0x977   :  { %v930_v12 = vadd.f32 %v926_v11, %v3014_v26  ;;  %v2201_v15 = vpop.f32.mrb[7].mxu1 }
 0x979   :  { %2590 = vtanh.f32 %v930_v12  ;;  %v2065_v27 = vmul.f32 -1.442695, %v930_v12 }
 0x97b   :  { %v823_v17 = vpop.f32.mrb[6].mxu0 }
 0x97c   :  { %v825_v20 = vpop.f32.mrb[7].mxu0  ;;  %v824_v28 = vadd.f32 %v823_v17, %v3097_v19 }
 0x97d   :  { %v826_v21 = vadd.f32 %v825_v20, %v3089_v23 }
 0x97e   :  { %v2062_v29 = vmul.f32 -1.442695, %v824_v28 }
 0x97f   :  { %2592 = vtanh.f32 %v826_v21  ;;  %v2063_v55 = vmul.f32 -1.442695, %v826_v21 }
 0x980   :  { %2594 = vpow2.f32 %v2065_v27 }
 0x981   :  { %2596 = vpow2.f32 %v2062_v29 }
 0x983   :  { %v2591_v22 = vpop.eup %2590 }
 0x984   :  { %940 = vrot.lane.b32.xlu1 %v2591_v22, %s2854_s3 }
 0x989   :  { %v2593_v24 = vpop.eup %2592 }
 0x98a   :  { %843 = vrot.lane.b32.xlu0 %v2593_v24, %s2855_s24  ;;  %v2595_v30 = vpop.eup %2594 }
 0x98b   :  { %v934_v31 = vadd.f32 1.0, %v2595_v30  ;;  %v2597_v32 = vpop.eup %2596 }
 0x98c   :  { %v834_v33 = vadd.f32 1.0, %v2597_v32 }
 0x98d   :  { %2598 = vrcp.f32 %v934_v31 }
 0x98e   :  { %2600 = vrcp.f32 %v834_v33 }
 0x997   :  { %v2599_v34 = vpop.eup %2598 }
 0x998   :  { %v2601_v38 = vpop.eup %2600  ;;  %v938_v42 = vmul.f32 %v2599_v34, %v3146_v18 }
 0x999   :  { %v841_v47 = vmul.f32 %v2601_v38, %v3150_v50 }
 0x9f6   :  { %v941_v35 = vpop.permute.xlu1 %940 }
 0x9f7   :  { %v943_v36 = vmul.f32 %v2599_v34, %v941_v35 }
 0x9f9   :  { %945 = vrot.lane.b32.xlu1 %v943_v36, %s2854_s3 }
 0x9fc   :  { %v844_v39 = vpop.permute.xlu0 %843 }
 0x9fd   :  { %v846_v40 = vmul.f32 %v2601_v38, %v844_v39 }
 0x9ff   :  { %848 = vrot.lane.b32.xlu0 %v846_v40, %s2855_s24 }
 0xa6b   :  { %v946_v43 = vpop.permute.xlu1 %945 }
 0xa6c   :  { %v3190_v44 = vadd.f32 %v946_v43, %v938_v42 }
 0xa6e   :  { %2602 = vtanh.f32 %v3190_v44 }
 0xa71   :  { %v849_v16 = vpop.permute.xlu0 %848 }
 0xa72   :  { %v3194_v48 = vadd.f32 %v849_v16, %v841_v47 }
 0xa74   :  { %2604 = vtanh.f32 %v3194_v48 }
 0xa75   :  { %2606 = vpow2.f32 %v2063_v55 }
 0xa78   :  { %v2603_v49 = vpop.eup %2602 }
 0xa79   :  { %951 = vrot.lane.b32.xlu1 %v2603_v49, %s2854_s3 }
 0xa7e   :  { %v2605_v54 = vpop.eup %2604 }
 0xa7f   :  { %854 = vrot.lane.b32.xlu0 %v2605_v54, %s2855_s24  ;;  %v2607_v18 = vpop.eup %2606 }
 0xa80   :  { %v835_v59 = vadd.f32 1.0, %v2607_v18 }
 0xa82   :  { %2608 = vrcp.f32 %v835_v59 }
 0xa8c   :  { %v2609_v50 = vpop.eup %2608 }
 0xaeb   :  { %v952_v53 = vpop.permute.xlu1 %951 }
 0xaec   :  { %v954_v60 = vmul.f32 %v2599_v34, %v952_v53 }
 0xaee   :  { %956 = vrot.lane.b32.xlu0 %v954_v60, %s2855_s24 }
 0xaf1   :  { %v855_v37 = vpop.permute.xlu0 %854 }
 0xaf2   :  { %v857_v56 = vmul.f32 %v2609_v50, %v855_v37 }
 0xaf4   :  { %v1910_v62 = vrot.slane %v857_v56, 4  ;;  %960 = vrot.lane.b32.xlu1 %v857_v56, %s2854_s3 }
 0xaf6   :  { %v3205_v5 = vsel %vm1923_vm4, %v1922_v4, %v1910_v62 }
 0xb60   :  { %v957_v6 = vpop.permute.xlu0 %956 }
 0xb61   :  { %2211 = vmatmul.mubr.msk.f32.vlgmr.msra.gmra.mrb[8].mxu0 %vm108_vm1, %v957_v6 }
 0xb62   :  { %2400 = vmatpush1.bf16.msra.mxu0 %v3024_v45  ;;  %1241 = vmatprep.mubr.f32.mxu0 %v2853_v1 }
 0xb63   :  { %2402 = vmatprep.subr.bf16.mxu0 %v3026_v46 }
 0xb66   :  { %2404 = vmatpush1.bf16.msra.mxu0 %v3031_v51  ;;  %v961_v63 = vpop.permute.xlu1 %960 }
 0xb67   :  { %2406 = vmatprep.subr.bf16.mxu0 %v3034_v52  ;;  %v963_v11 = vsel %vm108_vm1, %v957_v6, %v961_v63 }
 0xb68   :  { %2066 = vmatmul.mubr.msk.f32.vlgmr.msra.gmra.mrb[8].mxu1 %vm333_vm2, %v963_v11 }
 0xb69   :  { %2423 = vmatpush3.bf16.msra.mxu1 %v2984_v9  ;;  %2221 = vmatprep.mubr.msk.f32.mxu1 %vm2852_vm0, %v2853_v1 }
 0xb6a   :  { %2408 = vmatpush1.bf16.msra.mxu0 %v3037_v57  ;;  %2424 = vmatprep.subr.bf16.mxu1 %v2851_v0 }
 0xb6b   :  { %2410 = vmatprep.subr.bf16.mxu0 %v3040_v58 }
 0xb6d   :  { %2426 = vmatpush3.bf16.msra.mxu1 %v2988_v13 }
 0xb6e   :  { %2412 = vmatpush1.bf16.msra.mxu0 %v3044_v2  ;;  %2428 = vmatprep.subr.bf16.mxu1 %v3022_v41 }
 0xb6f   :  { %2414 = vmatprep.subr.bf16.mxu0 %v3047_v3 }
 0xb72   :  { %2416 = vmatpush1.bf16.msra.mxu0 %v3050_v8 }
 0xb73   :  { %2418 = vmatprep.subr.bf16.mxu0 %v3053_v10 }
 0xb76   :  { %2420 = vmatpush1.bf16.msra.mxu0 %v3056_v14 }
 0xb77   :  { %2451 = vmatprep.subr.bf16.mxu0 %v2851_v0 }
 0xc34   :  { %v1136_v7 = vpop.f32.mrb[8].mxu0 }
 0xc35   :  { %v1140_v12 = vadd.f32 %v1136_v7, %v3010_v25  ;;  %v2212_v15 = vpop.f32.mrb[9].mxu0 }
 0xc37   :  { %2610 = vtanh.f32 %v1140_v12  ;;  %v2070_v27 = vmul.f32 -1.442695, %v1140_v12 }
 0xc3b   :  { %v1033_v17 = vpop.f32.mrb[8].mxu1 }
 0xc3c   :  { %v1035_v20 = vpop.f32.mrb[9].mxu1  ;;  %v1034_v28 = vadd.f32 %v1033_v17, %v3097_v19 }
 0xc3d   :  { %v1036_v21 = vadd.f32 %v1035_v20, %v3089_v23 }
 0xc3e   :  { %v2067_v29 = vmul.f32 -1.442695, %v1034_v28 }
 0xc3f   :  { %2612 = vtanh.f32 %v1036_v21  ;;  %v2068_v59 = vmul.f32 -1.442695, %v1036_v21 }
 0xc40   :  { %2614 = vpow2.f32 %v2070_v27 }
 0xc41   :  { %v2611_v22 = vpop.eup %2610  ;;  %2616 = vpow2.f32 %v2067_v29 }
 0xc42   :  { %1150 = vrot.lane.b32.xlu1 %v2611_v22, %s2854_s3 }
 0xc49   :  { %v2613_v24 = vpop.eup %2612 }
 0xc4a   :  { %1053 = vrot.lane.b32.xlu0 %v2613_v24, %s2855_s24  ;;  %v2615_v30 = vpop.eup %2614 }
 0xc4b   :  { %v1144_v31 = vadd.f32 1.0, %v2615_v30  ;;  %v2617_v32 = vpop.eup %2616 }
 0xc4c   :  { %v1044_v33 = vadd.f32 1.0, %v2617_v32 }
 0xc4d   :  { %2618 = vrcp.f32 %v1144_v31 }
 0xc4e   :  { %2620 = vrcp.f32 %v1044_v33 }
 0xc57   :  { %v2619_v34 = vpop.eup %2618 }
 0xc58   :  { %v2621_v38 = vpop.eup %2620  ;;  %v1148_v42 = vmul.f32 %v2619_v34, %v3190_v44 }
 0xc59   :  { %v1051_v16 = vmul.f32 %v2621_v38, %v3194_v48 }
 0xcb4   :  { %v1151_v35 = vpop.permute.xlu1 %1150 }
 0xcb5   :  { %v1153_v36 = vmul.f32 %v2619_v34, %v1151_v35 }
 0xcb7   :  { %1155 = vrot.lane.b32.xlu1 %v1153_v36, %s2854_s3 }
 0xcbc   :  { %v1054_v39 = vpop.permute.xlu0 %1053 }
 0xcbd   :  { %v1056_v40 = vmul.f32 %v2621_v38, %v1054_v39 }
 0xcbf   :  { %1058 = vrot.lane.b32.xlu0 %v1056_v40, %s2855_s24 }
 0xd29   :  { %v1156_v43 = vpop.permute.xlu1 %1155 }
 0xd2a   :  { %v3237_v47 = vadd.f32 %v1156_v43, %v1148_v42 }
 0xd2c   :  { %2622 = vtanh.f32 %v3237_v47 }
 0xd31   :  { %v1059_v49 = vpop.permute.xlu0 %1058 }
 0xd32   :  { %v3241_v54 = vadd.f32 %v1059_v49, %v1051_v16 }
 0xd34   :  { %2624 = vtanh.f32 %v3241_v54 }
 0xd35   :  { %2626 = vpow2.f32 %v2068_v59 }
 0xd36   :  { %v2623_v55 = vpop.eup %2622 }
 0xd37   :  { %1161 = vrot.lane.b32.xlu1 %v2623_v55, %s2854_s3 }
 0xd3e   :  { %v2625_v18 = vpop.eup %2624 }
 0xd3f   :  { %1064 = vrot.lane.b32.xlu0 %v2625_v18, %s2855_s24  ;;  %v2627_v44 = vpop.eup %2626 }
 0xd40   :  { %v1045_v53 = vadd.f32 1.0, %v2627_v44 }
 0xd42   :  { %2628 = vrcp.f32 %v1045_v53 }
 0xd4c   :  { %v2629_v48 = vpop.eup %2628 }
 0xda9   :  { %v1162_v60 = vpop.permute.xlu1 %1161 }
 0xdaa   :  { %v1164_v50 = vmul.f32 %v2619_v34, %v1162_v60 }
 0xdac   :  { %1166 = vrot.lane.b32.xlu0 %v1164_v50, %s2855_s24 }
 0xdb1   :  { %v1065_v61 = vpop.permute.xlu0 %1064 }
 0xdb2   :  { %v1067_v37 = vmul.f32 %v2629_v48, %v1065_v61 }
 0xdb4   :  { %v1912_v56 = vrot.slane %v1067_v37, 2  ;;  %1170 = vrot.lane.b32.xlu1 %v1067_v37, %s2854_s3 }
 0xdb6   :  { %v3250_v62 = vsel %vm1925_vm5, %v3205_v5, %v1912_v56 }
 0xe1e   :  { %v1167_v4 = vpop.permute.xlu0 %1166 }
 0xe1f   :  { %2222 = vmatmul.mubr.msk.f32.vlgmr.msra.gmra.mrb[10].mxu1 %vm108_vm1, %v1167_v4 }
 0xe20   :  { %2430 = vmatpush1.bf16.msra.mxu1 %v3024_v45  ;;  %1451 = vmatprep.mubr.f32.mxu1 %v2853_v1 }
 0xe21   :  { %2432 = vmatprep.subr.bf16.mxu1 %v3026_v46 }
 0xe24   :  { %2434 = vmatpush1.bf16.msra.mxu1 %v3031_v51 }
 0xe25   :  { %2436 = vmatprep.subr.bf16.mxu1 %v3034_v52 }
 0xe26   :  { %v1171_v6 = vpop.permute.xlu1 %1170 }
 0xe27   :  { %v1173_v5 = vsel %vm108_vm1, %v1167_v4, %v1171_v6 }
 0xe28   :  { %2438 = vmatpush1.bf16.msra.mxu1 %v3037_v57  ;;  %2071 = vmatmul.mubr.msk.f32.vlgmr.msra.gmra.mrb[10].mxu0 %vm333_vm2, %v1173_v5 }
 0xe29   :  { %2440 = vmatprep.subr.bf16.mxu1 %v3040_v58  ;;  %2453 = vmatpush3.bf16.msra.mxu0 %v2984_v9 }
 0xe2a   :  { %2232 = vmatprep.mubr.msk.f32.mxu0 %vm2852_vm0, %v2853_v1  ;;  %2454 = vmatprep.subr.bf16.mxu0 %v2851_v0 }
 0xe2c   :  { %2442 = vmatpush1.bf16.msra.mxu1 %v3044_v2 }
 0xe2d   :  { %2444 = vmatprep.subr.bf16.mxu1 %v3047_v3  ;;  %2456 = vmatpush3.bf16.msra.mxu0 %v2988_v13 }
 0xe2e   :  { %2458 = vmatprep.subr.bf16.mxu0 %v3022_v41 }
 0xe30   :  { %2446 = vmatpush1.bf16.msra.mxu1 %v3050_v8 }
 0xe31   :  { %2448 = vmatprep.subr.bf16.mxu1 %v3053_v10 }
 0xe34   :  { %2450 = vmatpush1.bf16.msra.mxu1 %v3056_v14 }
 0xe35   :  { %2481 = vmatprep.subr.bf16.mxu1 %v2851_v0 }
 0xef2   :  { %v1346_v63 = vpop.f32.mrb[10].mxu1 }
 0xef3   :  { %v1350_v11 = vadd.f32 %v1346_v63, %v3014_v26  ;;  %v2223_v7 = vpop.f32.mrb[11].mxu1 }
 0xef5   :  { %2630 = vtanh.f32 %v1350_v11  ;;  %v2075_v22 = vmul.f32 -1.442695, %v1350_v11 }
 0xefb   :  { %v1243_v12 = vpop.f32.mrb[10].mxu0 }
 0xefc   :  { %v1245_v17 = vpop.f32.mrb[11].mxu0  ;;  %v1244_v24 = vadd.f32 %v1243_v12, %v3097_v19 }
 0xefd   :  { %v1246_v20 = vadd.f32 %v1245_v17, %v3089_v23 }
 0xefe   :  { %v2072_v27 = vmul.f32 -1.442695, %v1244_v24 }
 0xeff   :  { %v2631_v15 = vpop.eup %2630  ;;  %2632 = vtanh.f32 %v1246_v20  ;;  %v2073_v59 = vmul.f32 -1.442695, %v1246_v20 }
 0xf00   :  { %1360 = vrot.lane.b32.xlu1 %v2631_v15, %s2854_s3  ;;  %2634 = vpow2.f32 %v2075_v22 }
 0xf01   :  { %2636 = vpow2.f32 %v2072_v27 }
 0xf09   :  { %v2633_v21 = vpop.eup %2632 }
 0xf0a   :  { %1263 = vrot.lane.b32.xlu0 %v2633_v21, %s2855_s24  ;;  %v2635_v28 = vpop.eup %2634 }
 0xf0b   :  { %v1354_v29 = vadd.f32 1.0, %v2635_v28  ;;  %v2637_v30 = vpop.eup %2636 }
 0xf0c   :  { %v1254_v31 = vadd.f32 1.0, %v2637_v30 }
 0xf0d   :  { %2638 = vrcp.f32 %v1354_v29 }
 0xf0e   :  { %2640 = vrcp.f32 %v1254_v31 }
 0xf17   :  { %v2639_v32 = vpop.eup %2638 }
 0xf18   :  { %v2641_v35 = vpop.eup %2640  ;;  %v1358_v39 = vmul.f32 %v2639_v32, %v3237_v47 }
 0xf19   :  { %v1261_v43 = vmul.f32 %v2641_v35, %v3241_v54 }
 0xf72   :  { %v1361_v33 = vpop.permute.xlu1 %1360 }
 0xf73   :  { %v1363_v34 = vmul.f32 %v2639_v32, %v1361_v33 }
 0xf75   :  { %1365 = vrot.lane.b32.xlu1 %v1363_v34, %s2854_s3 }
 0xf7c   :  { %v1264_v36 = vpop.permute.xlu0 %1263 }
 0xf7d   :  { %v1266_v38 = vmul.f32 %v2641_v35, %v1264_v36 }
 0xf7f   :  { %1268 = vrot.lane.b32.xlu0 %v1266_v38, %s2855_s24 }
 0xfe7   :  { %v1366_v40 = vpop.permute.xlu1 %1365 }
 0xfe8   :  { %v3282_v42 = vadd.f32 %v1366_v40, %v1358_v39 }
 0xfea   :  { %2642 = vtanh.f32 %v3282_v42 }
 0xff1   :  { %v1269_v49 = vpop.permute.xlu0 %1268 }
 0xff2   :  { %v3286_v55 = vadd.f32 %v1269_v49, %v1261_v43 }
 0xff4   :  { %v2643_v16 = vpop.eup %2642  ;;  %2644 = vtanh.f32 %v3286_v55 }
 0xff5   :  { %1371 = vrot.lane.b32.xlu1 %v2643_v16, %s2854_s3  ;;  %2646 = vpow2.f32 %v2073_v59 }
 0xffe   :  { %v2645_v18 = vpop.eup %2644 }
 0xfff   :  { %1274 = vrot.lane.b32.xlu0 %v2645_v18, %s2855_s24  ;;  %v2647_v47 = vpop.eup %2646 }
0x1000   :  { %v1255_v44 = vadd.f32 1.0, %v2647_v47 }
0x1002   :  { %2648 = vrcp.f32 %v1255_v44 }
0x100c   :  { %v2649_v54 = vpop.eup %2648 }
0x1067   :  { %v1372_v53 = vpop.permute.xlu1 %1371 }
0x1068   :  { %v1374_v60 = vmul.f32 %v2639_v32, %v1372_v53 }
0x106a   :  { %1376 = vrot.lane.b32.xlu0 %v1374_v60, %s2855_s24 }
0x1071   :  { %v1275_v50 = vpop.permute.xlu0 %1274 }
0x1072   :  { %v3292_v48 = vmul.f32 %v2649_v54, %v1275_v50 }
0x1074   :  { %1380 = vrot.lane.b32.xlu1 %v3292_v48, %s2854_s3 }
0x10dc   :  { %v1377_v61 = vpop.permute.xlu0 %1376 }
0x10dd   :  { %2233 = vmatmul.mubr.msk.f32.vlgmr.msra.gmra.mrb[12].mxu0 %vm108_vm1, %v1377_v61 }
0x10de   :  { %2460 = vmatpush1.bf16.msra.mxu0 %v3024_v45  ;;  %1661 = vmatprep.mubr.f32.mxu0 %v2853_v1 }
0x10df   :  { %2462 = vmatprep.subr.bf16.mxu0 %v3026_v46 }
0x10e2   :  { %2464 = vmatpush1.bf16.msra.mxu0 %v3031_v51 }
0x10e3   :  { %2466 = vmatprep.subr.bf16.mxu0 %v3034_v52 }
0x10e6   :  { %2468 = vmatpush1.bf16.msra.mxu0 %v3037_v57  ;;  %v1381_v37 = vpop.permute.xlu1 %1380 }
0x10e7   :  { %2470 = vmatprep.subr.bf16.mxu0 %v3040_v58  ;;  %v1383_v56 = vsel %vm108_vm1, %v1377_v61, %v1381_v37 }
0x10e8   :  { %2076 = vmatmul.mubr.msk.f32.vlgmr.msra.gmra.mrb[12].mxu1 %vm333_vm2, %v1383_v56 }
0x10e9   :  { %2483 = vmatpush3.bf16.msra.mxu1 %v2984_v9  ;;  %2243 = vmatprep.mubr.msk.f32.mxu1 %vm2852_vm0, %v2853_v1 }
0x10ea   :  { %2472 = vmatpush1.bf16.msra.mxu0 %v3044_v2  ;;  %2484 = vmatprep.subr.bf16.mxu1 %v2851_v0 }
0x10eb   :  { %2474 = vmatprep.subr.bf16.mxu0 %v3047_v3 }
0x10ed   :  { %2486 = vmatpush3.bf16.msra.mxu1 %v2988_v13 }
0x10ee   :  { %2476 = vmatpush1.bf16.msra.mxu0 %v3050_v8  ;;  %2488 = vmatprep.subr.bf16.mxu1 %v3022_v41 }
0x10ef   :  { %2478 = vmatprep.subr.bf16.mxu0 %v3053_v10 }
0x10f2   :  { %2480 = vmatpush1.bf16.msra.mxu0 %v3056_v14 }
0x11b0   :  { %v1556_v4 = vpop.f32.mrb[12].mxu0 }
0x11b1   :  { %v1560_v6 = vadd.f32 %v1556_v4, %v3010_v25  ;;  %v2234_v5 = vpop.f32.mrb[13].mxu0 }
0x11b3   :  { %2650 = vtanh.f32 %v1560_v6  ;;  %v2080_v13 = vmul.f32 -1.442695, %v1560_v6 }
0x11bb   :  { %v1453_v63 = vpop.f32.mrb[12].mxu1 }
0x11bc   :  { %v1455_v0 = vpop.f32.mrb[13].mxu1  ;;  %v1454_v12 = vadd.f32 %v1453_v63, %v3097_v19 }
0x11bd   :  { %v2651_v9 = vpop.eup %2650  ;;  %v1456_v11 = vadd.f32 %v1455_v0, %v3089_v23 }
0x11be   :  { %1570 = vrot.lane.b32.xlu1 %v2651_v9, %s2854_s3  ;;  %v2077_v25 = vmul.f32 -1.442695, %v1454_v12 }
0x11bf   :  { %2652 = vtanh.f32 %v1456_v11  ;;  %v2078_v39 = vmul.f32 -1.442695, %v1456_v11 }
0x11c0   :  { %2654 = vpow2.f32 %v2080_v13 }
0x11c9   :  { %v2653_v7 = vpop.eup %2652 }
0x11ca   :  { %1473 = vrot.lane.b32.xlu0 %v2653_v7, %s2855_s24  ;;  %v2655_v41 = vpop.eup %2654 }
0x11cb   :  { %v1564_v15 = vadd.f32 1.0, %v2655_v41 }
0x11cd   :  { %2656 = vrcp.f32 %v1564_v15 }
0x11ce   :  { %2658 = vpow2.f32 %v2077_v25 }
0x11d7   :  { %v2657_v17 = vpop.eup %2656 }
0x11d8   :  { %v2659_v21 = vpop.eup %2658  ;;  %v1568_v30 = vmul.f32 %v2657_v17, %v3282_v42 }
0x11d9   :  { %v1464_v24 = vadd.f32 1.0, %v2659_v21 }
0x11db   :  { %2660 = vrcp.f32 %v1464_v24 }
0x11e5   :  { %v2661_v27 = vpop.eup %2660 }
0x11e6   :  { %v1471_v34 = vmul.f32 %v2661_v27, %v3286_v55 }
0x1230   :  { %v1571_v20 = vpop.permute.xlu1 %1570 }
0x1231   :  { %v1573_v22 = vmul.f32 %v2657_v17, %v1571_v20 }
0x1233   :  { %1575 = vrot.lane.b32.xlu1 %v1573_v22, %s2854_s3 }
0x123c   :  { %v1474_v28 = vpop.permute.xlu0 %1473 }
0x123d   :  { %v1476_v29 = vmul.f32 %v2661_v27, %v1474_v28 }
0x123f   :  { %1478 = vrot.lane.b32.xlu0 %v1476_v29, %s2855_s24 }
0x12a5   :  { %v1576_v31 = vpop.permute.xlu1 %1575 }
0x12a6   :  { %v3325_v32 = vadd.f32 %v1576_v31, %v1568_v30 }
0x12a8   :  { %2662 = vtanh.f32 %v3325_v32 }
0x12b1   :  { %v1479_v35 = vpop.permute.xlu0 %1478 }
0x12b2   :  { %v2663_v33 = vpop.eup %2662  ;;  %v3330_v36 = vadd.f32 %v1479_v35, %v1471_v34 }
0x12b3   :  { %1581 = vrot.lane.b32.xlu1 %v2663_v33, %s2854_s3 }
0x12b4   :  { %2664 = vtanh.f32 %v3330_v36 }
0x12b5   :  { %2666 = vpow2.f32 %v2078_v39 }
0x12be   :  { %v2665_v38 = vpop.eup %2664 }
0x12bf   :  { %1484 = vrot.lane.b32.xlu0 %v2665_v38, %s2855_s24  ;;  %v2667_v42 = vpop.eup %2666 }
0x12c0   :  { %v1465_v16 = vadd.f32 1.0, %v2667_v42 }
0x12c2   :  { %2668 = vrcp.f32 %v1465_v16  ;;  %v1930_v16 = vld [vmem:[#allocation10] sm:$0xff] }
0x12cc   :  { %v2669_v49 = vpop.eup %2668 }
0x1325   :  { %v1582_v40 = vpop.permute.xlu1 %1581 }
0x1326   :  { %v1584_v43 = vmul.f32 %v2657_v17, %v1582_v40 }
0x1328   :  { %1586 = vrot.lane.b32.xlu0 %v1584_v43, %s2855_s24 }
0x1331   :  { %v1485_v18 = vpop.permute.xlu0 %1484 }
0x1332   :  { %v3335_v55 = vmul.f32 %v2669_v49, %v1485_v18  ;;  %v1931_v49 = vld [vmem:[#allocation10 + $0x8] sm:$0xff]  ;;  %v1932_v18 = vld [vmem:[#allocation10 + $0x10] sm:$0xff] }
0x1334   :  { %1590 = vrot.lane.b32.xlu1 %v3335_v55, %s2854_s3  ;;  %v1914_v20 = vrot.slane %v3335_v55, 6  ;;  %v1933_v55 = vld [vmem:[#allocation10 + $0x18] sm:$0xff] }
0x1336   :  { %v1927_v27 = vsel %vm1921_vm3, %v3292_v48, %v1914_v20 }
0x139a   :  { %v1587_v59 = vpop.permute.xlu0 %1586 }
0x139b   :  { %2244 = vmatmul.mubr.msk.f32.vlgmr.msra.gmra.mrb[14].mxu1 %vm108_vm1, %v1587_v59 }
0x139c   :  { %2490 = vmatpush1.bf16.msra.mxu1 %v3024_v45  ;;  %1871 = vmatprep.mubr.f32.mxu1 %v2853_v1 }
0x139d   :  { %2492 = vmatprep.subr.bf16.mxu1 %v3026_v46 }
0x13a0   :  { %2494 = vmatpush1.bf16.msra.mxu1 %v3031_v51 }
0x13a1   :  { %2496 = vmatprep.subr.bf16.mxu1 %v3034_v52 }
0x13a4   :  { %2498 = vmatpush1.bf16.msra.mxu1 %v3037_v57 }
0x13a5   :  { %2500 = vmatprep.subr.bf16.mxu1 %v3040_v58 }
0x13a6   :  { %v1591_v47 = vpop.permute.xlu1 %1590 }
0x13a7   :  { %v1593_v1 = vsel %vm108_vm1, %v1587_v59, %v1591_v47  ;;  %v2515_v59 = vpack.c.bf16 %v1933_v55, %v1932_v18  ;;  %v1934_v47 = vld [vmem:[#allocation10 + $0x20] sm:$0xff] }
0x13a8   :  { %2502 = vmatpush1.bf16.msra.mxu1 %v3044_v2  ;;  %2081 = vmatmul.mubr.msk.f32.vlgmr.msra.gmra.mrb[14].mxu0 %vm333_vm2, %v1593_v1  ;;  %v1935_v1 = vld [vmem:[#allocation10 + $0x28] sm:$0xff] }
0x13a9   :  { %2504 = vmatprep.subr.bf16.mxu1 %v3047_v3  ;;  %2262 = vmatprep.mubr.msk.f32.mxu0 %vm1945_vm6, %v3250_v62 }
0x13ac   :  { %2506 = vmatpush1.bf16.msra.mxu1 %v3050_v8 }
0x13ad   :  { %2508 = vmatprep.subr.bf16.mxu1 %v3053_v10 }
0x13b0   :  { %2510 = vmatpush1.bf16.msra.mxu1 %v3056_v14 }
0x146e   :  { %v1766_v45 = vpop.f32.mrb[14].mxu1 }
0x146f   :  { %v1770_v46 = vadd.f32 %v1766_v45, %v3014_v26  ;;  %v2245_v51 = vpop.f32.mrb[15].mxu1 }
0x1470   :  { %v1937_v51 = vld [vmem:[#allocation10 + $0x38] sm:$0xff] }
0x1471   :  { %2670 = vtanh.f32 %v1770_v46  ;;  %v2085_v8 = vmul.f32 -1.442695, %v1770_v46  ;;  %v1936_v46 = vld [vmem:[#allocation10 + $0x30] sm:$0xff] }
0x147b   :  { %v2671_v52 = vpop.eup %2670  ;;  %v1663_v57 = vpop.f32.mrb[14].mxu0 }
0x147c   :  { %1780 = vrot.lane.b32.xlu1 %v2671_v52, %s2854_s3  ;;  %v1665_v58 = vpop.f32.mrb[15].mxu0  ;;  %v1664_v14 = vadd.f32 %v1663_v57, %v3097_v19  ;;  %v2523_v57 = vpack.c.bf16 %v1937_v51, %v1936_v46 }
0x147d   :  { %v1666_v2 = vadd.f32 %v1665_v58, %v3089_v23 }
0x147e   :  { %v2082_v26 = vmul.f32 -1.442695, %v1664_v14 }
0x147f   :  { %2672 = vtanh.f32 %v1666_v2  ;;  %v2083_v13 = vmul.f32 -1.442695, %v1666_v2 }
0x1480   :  { %2674 = vpow2.f32 %v2085_v8 }
0x1489   :  { %v2673_v3 = vpop.eup %2672 }
0x148a   :  { %1683 = vrot.lane.b32.xlu0 %v2673_v3, %s2855_s24  ;;  %v2675_v10 = vpop.eup %2674 }
0x148b   :  { %v1774_v62 = vadd.f32 1.0, %v2675_v10 }
0x148d   :  { %2676 = vrcp.f32 %v1774_v62 }
0x148e   :  { %2678 = vpow2.f32 %v2082_v26 }
0x1497   :  { %v2677_v44 = vpop.eup %2676 }
0x1498   :  { %v2679_v54 = vpop.eup %2678  ;;  %v1778_v4 = vmul.f32 %v2677_v44, %v3325_v32 }
0x1499   :  { %v1674_v50 = vadd.f32 1.0, %v2679_v54 }
0x149b   :  { %2680 = vrcp.f32 %v1674_v50 }
0x14a5   :  { %v2681_v61 = vpop.eup %2680 }
0x14a6   :  { %v1681_v63 = vmul.f32 %v2681_v61, %v3330_v36 }
0x14ee   :  { %v1781_v53 = vpop.permute.xlu1 %1780 }
0x14ef   :  { %v1783_v60 = vmul.f32 %v2677_v44, %v1781_v53 }
0x14f1   :  { %1785 = vrot.lane.b32.xlu1 %v1783_v60, %s2854_s3  ;;  %v2089_v60 = vld [vmem:[%s3407_s7] ss:$0 sm:$0xff] }
0x14fc   :  { %v1684_v37 = vpop.permute.xlu0 %1683 }
0x14fd   :  { %v1686_v56 = vmul.f32 %v2681_v61, %v1684_v37 }
0x14ff   :  { %1688 = vrot.lane.b32.xlu0 %v1686_v56, %s2855_s24 }
0x1563   :  { %v1786_v6 = vpop.permute.xlu1 %1785 }
0x1564   :  { %v1788_v5 = vadd.f32 %v1786_v6, %v1778_v4 }
0x1566   :  { %2682 = vtanh.f32 %v1788_v5 }
0x1570   :  { %v2683_v9 = vpop.eup %2682 }
0x1571   :  { %1791 = vrot.lane.b32.xlu1 %v2683_v9, %s2854_s3  ;;  %v1689_v0 = vpop.permute.xlu0 %1688 }
0x1572   :  { %v1691_v11 = vadd.f32 %v1689_v0, %v1681_v63 }
0x1574   :  { %2684 = vtanh.f32 %v1691_v11 }
0x1575   :  { %2686 = vpow2.f32 %v2083_v13 }
0x157e   :  { %v2685_v7 = vpop.eup %2684 }
0x157f   :  { %1694 = vrot.lane.b32.xlu0 %v2685_v7, %s2855_s24  ;;  %v2687_v15 = vpop.eup %2686 }
0x1580   :  { %v1675_v25 = vadd.f32 1.0, %v2687_v15 }
0x1582   :  { %2688 = vrcp.f32 %v1675_v25 }
0x158c   :  { %v2689_v17 = vpop.eup %2688 }
0x15e3   :  { %v1792_v41 = vpop.permute.xlu1 %1791 }
0x15e4   :  { %v1794_v12 = vmul.f32 %v2677_v44, %v1792_v41 }
0x15e6   :  { %1796 = vrot.lane.b32.xlu0 %v1794_v12, %s2855_s24 }
0x15f1   :  { %v1695_v21 = vpop.permute.xlu0 %1694 }
0x15f2   :  { %v1697_v22 = vmul.f32 %v2689_v17, %v1695_v21 }
0x15f4   :  { %v1916_v24 = vrot.slane %v1697_v22, 4  ;;  %1800 = vrot.lane.b32.xlu1 %v1697_v22, %s2854_s3 }
0x15f6   :  { %v1928_v28 = vsel %vm1923_vm4, %v1927_v27, %v1916_v24 }
0x1658   :  { %v1797_v29 = vpop.permute.xlu0 %1796 }
0x1666   :  { %v1801_v30 = vpop.permute.xlu1 %1800 }
0x1667   :  { %v1803_v31 = vsel %vm108_vm1, %v1797_v29, %v1801_v30 }
0x1668   :  { %2086 = vmatmul.mubr.msk.f32.vlgmr.msra.gmra.mrb[16].mxu1 %vm333_vm2, %v1803_v31 }
0x173b   :  { %v1873_v32 = vpop.f32.mrb[16].mxu1 }
0x173c   :  { %v1875_v33 = vpop.f32.mrb[17].mxu1  ;;  %v1874_v36 = vadd.f32 %v1873_v32, %v3097_v19  ;;  %v2519_v19 = vpack.c.bf16 %v1935_v1, %v1934_v47 }
0x173d   :  { %v1876_v34 = vadd.f32 %v1875_v33, %v3089_v23  ;;  %v2511_v23 = vpack.c.bf16 %v1931_v49, %v1930_v16 }
0x173e   :  { %v2087_v38 = vmul.f32 -1.442695, %v1874_v36 }
0x173f   :  { %2690 = vtanh.f32 %v1876_v34  ;;  %2512 = vmatprep.subr.bf16.mxu0 %v2511_v23  ;;  %v2088_v3 = vmul.f32 -1.442695, %v1876_v34 }
0x1740   :  { %2692 = vpow2.f32 %v2087_v38  ;;  %2514 = vmatpush3.bf16.msra.mxu0 %v2511_v23 }
0x1741   :  { %2516 = vmatprep.subr.bf16.mxu0 %v2515_v59 }
0x1744   :  { %2518 = vmatpush3.bf16.msra.mxu0 %v2515_v59 }
0x1745   :  { %2520 = vmatprep.subr.bf16.mxu0 %v2519_v19 }
0x1748   :  { %2522 = vmatpush3.bf16.msra.mxu0 %v2519_v19 }
0x1749   :  { %v2691_v35 = vpop.eup %2690  ;;  %2524 = vmatprep.subr.bf16.mxu0 %v2523_v57 }
0x174a   :  { %1893 = vrot.lane.b32.xlu0 %v2691_v35, %s2855_s24  ;;  %v2693_v48 = vpop.eup %2692 }
0x174b   :  { %v1884_v39 = vadd.f32 1.0, %v2693_v48 }
0x174c   :  { %2526 = vmatpush3.bf16.msra.mxu0 %v2523_v57 }
0x174d   :  { %2694 = vrcp.f32 %v1884_v39 }
0x1757   :  { %v2695_v40 = vpop.eup %2694 }
0x1758   :  { %v1891_v45 = vmul.f32 %v2695_v40, %v1691_v11 }
0x17bc   :  { %v1894_v42 = vpop.permute.xlu0 %1893 }
0x17bd   :  { %v1896_v43 = vmul.f32 %v2695_v40, %v1894_v42 }
0x17bf   :  { %1898 = vrot.lane.b32.xlu1 %v1896_v43, %s2855_s24 }
0x1831   :  { %v1899_v52 = vpop.permute.xlu1 %1898 }
0x1832   :  { %v1901_v58 = vadd.f32 %v1899_v52, %v1891_v45 }
0x1834   :  { %2696 = vtanh.f32 %v1901_v58 }
0x1835   :  { %2698 = vpow2.f32 %v2088_v3 }
0x183e   :  { %v2697_v2 = vpop.eup %2696 }
0x183f   :  { %1904 = vrot.lane.b32.xlu0 %v2697_v2, %s2855_s24  ;;  %v2699_v8 = vpop.eup %2698 }
0x1840   :  { %v1885_v10 = vadd.f32 1.0, %v2699_v8 }
0x1842   :  { %2700 = vrcp.f32 %v1885_v10 }
0x184c   :  { %v2701_v14 = vpop.eup %2700 }
0x18b1   :  { %v1905_v62 = vpop.permute.xlu0 %1904 }
0x18b2   :  { %v1907_v26 = vmul.f32 %v2701_v14, %v1905_v62 }
0x18b4   :  { %v1919_v44 = vrot.slane %v1907_v26, 2 }
0x18b6   :  { %v1929_v53 = vsel %vm1925_vm5, %v1928_v28, %v1919_v44 }
0x18b7   :  { %2263 = vmatmul.mubr.msk.f32.vlgmr.msra.gmra.mrb[16].mxu0 %vm1945_vm6, %v1929_v53 }
0x198a   :  { %v2264_v54 = vpop.f32.mrb[16].mxu0 }
0x198b   :  { %v2024_v50 = vadd.f32 %v2264_v54, %v2089_v60  ;;  %v2018_v61 = vpop.f32.mrb[17].mxu0 }
0x198c   :  { %v2019_v37 = vadd.f32 %v2089_v60, %v2018_v61 }
0x198d   :  { %2028 = vst [vmem:[#allocation11 + $0x8] sm:$0xff] %v2024_v50 }
0x198e   :  { %2027 = vst [vmem:[#allocation11] sm:$0xff] %v2019_v37 }
0x198f   :  { %2823 = shalt.err (!%p2820_p2)
}
0x1990   :  { %s2824_s7 = scalar_lea.hbm %s3408_s8, 256 }
0x1991   :  { %p2825_p3 = scmp.ne.s32.totalorder %s3408_s8, %s2824_s7  ;;  %p2828_p4 = scmp.lt.u32.totalorder %s2824_s7, %s3408_s8 }
0x1993   :  { %p2830_p5 = pnand %p2828_p4, %p2825_p3 }
0x1995   :  { %2833 = shalt.err (!%p2830_p5)
}
0x1996   :  { %2040 = dma.vmem_to_hbm [thread:$0]  %s2035_s1, 256, %s3408_s8, [#allocation4], %s2843_s15, %s2843_s15, %s2844_s16  }
0x1997   :  { %2840 = dma.done.wait [#allocation4], 256  }
0x1998   :  { %2841 = vsyncadd [#allocation4], 4294967040 }
0x1999   :  { %2044 = vsyncpa [#allocation3], 1 }
0x199a   :  { %2045 = vsyncpa [#allocation6], 1 }
0x199b   :  { %2046 = vsyncpa [#allocation9], 1 }
0x199c   :  { %2047 = vsyncpa [#allocation4], 1 }

</bundles_post_ra>
